<compile_context>
chip_gen: v5e
topology: v5e:2x2
jax: 0.10.0
libtpu: 0.0.40
codegen_flags: <defaults>
</compile_context>

<pallas_src>
import math
import functools

import jax
import jax.numpy as jnp
from jax import lax
from jax.experimental import pallas as pl
from jax.experimental.pallas import tpu as pltpu


def emau_kernel(x_ref, mu0t_ref, w1_ref, b1_ref, w2_ref, bn_s_ref, bn_b_ref,
                out_ref, mu_out_ref, *, stage_num, bt):
    mu0t = mu0t_ref[...]                  # (K, C) f32 initial bases (transposed)
    w1 = w1_ref[...]                      # (C, C) bf16
    w2 = w2_ref[...]                      # (C, C) bf16
    b1 = b1_ref[...]                      # (C, 1) f32
    bn_s = bn_s_ref[...]                  # (C, 1) f32 folded BN scale
    bn_b = bn_b_ref[...]                  # (C, 1) f32 folded BN bias

    def per_image(b, carry):
        idn = x_ref[b]                    # (C, N) bf16 residual branch
        # conv1 (1x1): bf16 MXU operands, f32 accumulation, + bias
        xb = jnp.dot(w1, idn, preferred_element_type=jnp.float32) + b1   # (C, N) f32
        xb_bf = xb.astype(jnp.bfloat16)

        mut = mu0t                        # (K, C) f32 EM iterate
        zt = None
        for _ in range(stage_num):
            # attention logits in lane-dense (K, N): softmax over K = sublane reduce
            zt = jnp.dot(mut.astype(jnp.bfloat16), xb_bf,
                         preferred_element_type=jnp.float32)             # (K, N)
            zt = zt - jnp.max(zt, axis=0, keepdims=True)
            zt = jnp.exp(zt)
            # large (1, N) softmax denominator: approx reciprocal (EUP slot)
            zt = zt * pl.reciprocal(jnp.sum(zt, axis=0, keepdims=True), approx=True)
            # per-basis pixel normalization: tiny (K, 1) denominator -> exact
            zn = zt * pl.reciprocal(1e-6 + jnp.sum(zt, axis=1, keepdims=True),
                                    approx=False)
            # mu update: contract pixels, (K,N) x (C,N) -> (K, C)
            mut = lax.dot_general(zn.astype(jnp.bfloat16), xb_bf,
                                  (((1,), (1,)), ((), ())),
                                  preferred_element_type=jnp.float32)
            # l2-normalize each basis over channels: tiny (K, 1) denominator -> exact
            nrm = jnp.sqrt(jnp.sum(mut * mut, axis=1, keepdims=True))
            mut = mut * pl.reciprocal(1e-6 + nrm, approx=False)

        mu_out_ref[b] = mut               # stored (K, C)

        # reconstruction mu @ z^T == mut^T @ zt: contract K -> (C, N)
        xr = lax.dot_general(mut.astype(jnp.bfloat16), zt.astype(jnp.bfloat16),
                             (((0,), (0,)), ((), ())),
                             preferred_element_type=jnp.float32)
        xr = jnp.maximum(xr, 0.0)         # ReLU
        # fused epilogue: conv2 (1x1, no bias) + folded BN + residual add + ReLU
        y = jnp.dot(w2, xr.astype(jnp.bfloat16), preferred_element_type=jnp.float32)
        y = y * bn_s + bn_b
        out_ref[b] = jnp.maximum(y + idn.astype(jnp.float32), 0.0)
        return carry

    lax.fori_loop(0, bt, per_image, 0)


def _vmem_capacity_bytes():
    """Physical VMEM per TensorCore; conservative (v7x-sized) fallback."""
    try:
        info = pltpu.get_tpu_info()
        for name in ("vmem_capacity_bytes", "vmem_bytes", "vmem_size_bytes"):
            v = getattr(info, name, None)
            if v:
                return int(v)
    except Exception:
        pass
    return 64 * 1024 * 1024


def _per_step_bytes(C, N, bt, K):
    # double-buffered bf16 input block + f32 output block, (C,N)-sized f32 live
    # temporaries inside the per-image loop, resident weights, mu_out block.
    return (C * N * bt * (2 * 2 + 4 * 2)      # in (bf16) + out (f32), 2 buffers each
            + 20 * C * N * 4                  # xb, xb_bf, xr, y, zt/zn + slack
            + 8 * C * C + 2 * bt * K * C * 4)


def _pick_batch_tile(B, C, N, K, is_small_vmem):
    """Largest divisor of B fitting the VMEM budget; keep >=2 grid steps on v7x."""
    budget = (28 if is_small_vmem else 80) * 1024 * 1024
    best = 1
    for bt in range(1, B + 1):
        if B % bt:
            continue
        if is_small_vmem and B >= 2 and B // bt < 2:
            continue                          # keep both v7x TensorCores fed
        if _per_step_bytes(C, N, bt, K) <= budget:
            best = bt
    return best


def emau_forward(x_nchw, mu0, w1, b1, w2, bn_gamma, bn_beta, bn_mean, bn_var,
                 stage_num=3, bn_eps=1e-5, batch_tile=None):
    assert stage_num >= 1, "stage_num must be >= 1"
    B, C, H, W = x_nchw.shape
    N = H * W
    K = mu0.shape[-1]

    vmem_cap = _vmem_capacity_bytes()
    is_small_vmem = vmem_cap <= 64 * 1024 * 1024   # v7x-class part

    if batch_tile is None:
        bt = _pick_batch_tile(B, C, N, K, is_small_vmem)
    else:
        bt = int(batch_tile)
        assert B % bt == 0
        if is_small_vmem and B >= 2 and B // bt < 2:
            # on 2-TC parts a single grid step idles a TensorCore: shrink the tile
            bt = max(d for d in range(1, B) if B % d == 0 and B // d >= 2)

    # Layout plumbing (outside the kernel): (B,C,H,W) -> (B, C, N) slab; MXU feeds
    # are bf16 (f32 accumulation inside the kernel).  Block last dim is the full N
    # extent, so any H*W is legal; N % 128 == 0 keeps stores unmasked (lane-dense).
    x = x_nchw.reshape(B, C, N).astype(jnp.bfloat16)
    mu0_t = mu0.reshape(C, K).T.astype(jnp.float32)               # (K, C)

    # TODO(synk): BatchNorm2d is folded from running stats (inference mode);
    # train-mode batch statistics are not reproduced.
    inv_std = 1.0 / jnp.sqrt(bn_var.astype(jnp.float32) + bn_eps)
    bn_scale = (bn_gamma * inv_std).reshape(C, 1).astype(jnp.float32)
    bn_bias = (bn_beta - bn_mean * bn_gamma * inv_std).reshape(C, 1).astype(jnp.float32)
    b1_2d = b1.reshape(C, 1).astype(jnp.float32)

    grid = (B // bt,)

    per_step = _per_step_bytes(C, N, bt, K)
    vmem_ceiling = (52 if is_small_vmem else 100) * 1024 * 1024
    vmem_limit = int(min(vmem_ceiling, max(8 * 1024 * 1024, 2 * per_step)))

    flops = 4 * C * C * B * N + B * stage_num * 4 * K * C * N + 2 * B * C * K * N
    transcendentals = B * stage_num * K * N
    bytes_accessed = 2 * B * C * N + 4 * B * C * N + 4 * (2 * C * C + 3 * C + C * K + B * K * C)

    kernel = functools.partial(emau_kernel, stage_num=stage_num, bt=bt)
    out, mu_out = pl.pallas_call(
        kernel,
        out_shape=(jax.ShapeDtypeStruct((B, C, N), jnp.float32),
                   jax.ShapeDtypeStruct((B, K, C), jnp.float32)),
        grid=grid,
        in_specs=[
            pl.BlockSpec((bt, C, N), lambda i: (i, 0, 0)),   # x slab, bt images / step
            pl.BlockSpec((K, C), lambda i: (0, 0)),          # mu0^T (broadcast)
            pl.BlockSpec((C, C), lambda i: (0, 0)),          # conv1 weight (bf16)
            pl.BlockSpec((C, 1), lambda i: (0, 0)),          # conv1 bias
            pl.BlockSpec((C, C), lambda i: (0, 0)),          # conv2 weight (bf16)
            pl.BlockSpec((C, 1), lambda i: (0, 0)),          # folded BN scale
            pl.BlockSpec((C, 1), lambda i: (0, 0)),          # folded BN bias
        ],
        out_specs=(pl.BlockSpec((bt, C, N), lambda i: (i, 0, 0)),
                   pl.BlockSpec((bt, K, C), lambda i: (i, 0, 0))),
        compiler_params=pltpu.CompilerParams(
            dimension_semantics=("parallel",),
            vmem_limit_bytes=vmem_limit),
        cost_estimate=pl.CostEstimate(flops=int(flops),
                                      transcendentals=int(transcendentals),
                                      bytes_accessed=int(bytes_accessed)),
    )(x, mu0_t, w1.astype(jnp.bfloat16), b1_2d, w2.astype(jnp.bfloat16),
      bn_scale, bn_bias)

    out = out.reshape(B, C, H, W)
    mu_out = jnp.transpose(mu_out, (0, 2, 1))                     # (B, C, K)
    return out, mu_out


def emau_reference(x_nchw, mu0, w1, b1, w2, bn_gamma, bn_beta, bn_mean, bn_var,
                   stage_num=3, bn_eps=1e-5):
    """Pure-JAX f32 reference mirroring the PyTorch forward (eval-mode BN)."""
    B, C, H, W = x_nchw.shape
    N = H * W
    idn = x_nchw.reshape(B, C, N)
    x = jnp.einsum('oc,bcn->bon', w1, idn) + b1.reshape(1, C, 1)
    mu = jnp.broadcast_to(mu0, (B, C, mu0.shape[-1]))
    z = None
    for _ in range(stage_num):
        z = jnp.einsum('bcn,bck->bnk', x, mu)
        z = jax.nn.softmax(z, axis=2)
        z_ = z / (1e-6 + jnp.sum(z, axis=1, keepdims=True))
        mu = jnp.einsum('bcn,bnk->bck', x, z_)
        mu = mu / (1e-6 + jnp.sqrt(jnp.sum(mu * mu, axis=1, keepdims=True)))
    xr = jnp.einsum('bck,bnk->bcn', mu, z)
    xr = jnp.maximum(xr, 0.0)
    y = jnp.einsum('oc,bcn->bon', w2, xr)
    inv_std = 1.0 / jnp.sqrt(bn_var + bn_eps)
    y = y * (bn_gamma * inv_std).reshape(1, C, 1) \
        + (bn_beta - bn_mean * bn_gamma * inv_std).reshape(1, C, 1)
    out = jnp.maximum(y + idn, 0.0)
    return out.reshape(B, C, H, W), mu


if __name__ == "__main__":
    B, C, H, W, K = 4, 32, 16, 16, 8
    stage_num = 3

    key = jax.random.PRNGKey(0)
    k_x, k_mu, k_w1, k_b1, k_w2 = jax.random.split(key, 5)

    x = jax.random.normal(k_x, (B, C, H, W), jnp.float32)

    # mu: normal(0, sqrt(2/k)) then l2-normalized along channel dim (as in __init__)
    mu0 = jax.random.normal(k_mu, (1, C, K), jnp.float32) * math.sqrt(2.0 / K)
    mu0 = mu0 / (1e-6 + jnp.sqrt(jnp.sum(mu0 * mu0, axis=1, keepdims=True)))

    # conv weights: normal(0, sqrt(2/n)) with n = 1*1*out_channels = C
    w1 = jax.random.normal(k_w1, (C, C), jnp.float32) * math.sqrt(2.0 / C)
    w2 = jax.random.normal(k_w2, (C, C), jnp.float32) * math.sqrt(2.0 / C)
    b1 = jax.random.uniform(k_b1, (C,), jnp.float32,
                            minval=-1.0 / math.sqrt(C), maxval=1.0 / math.sqrt(C))

    # BatchNorm params: weight=1, bias=0, running stats at defaults
    bn_gamma = jnp.ones((C,), jnp.float32)
    bn_beta = jnp.zeros((C,), jnp.float32)
    bn_mean = jnp.zeros((C,), jnp.float32)
    bn_var = jnp.ones((C,), jnp.float32)

    out, mu_out = emau_forward(x, mu0, w1, b1, w2, bn_gamma, bn_beta, bn_mean,
                               bn_var, stage_num=stage_num)
    out = jax.block_until_ready(out)
    mu_out = jax.block_until_ready(mu_out)

    ref_out, ref_mu = emau_reference(x, mu0, w1, b1, w2, bn_gamma, bn_beta,
                                     bn_mean, bn_var, stage_num=stage_num)
    assert out.shape == (B, C, H, W) and mu_out.shape == (B, C, K)
    # Tolerances accommodate the bf16 MXU operands (f32 accumulation) used for the
    # conv / EM matmuls and the approx softmax reciprocal; a genuine layout or
    # matmul bug would produce O(1) errors, far above these bounds.
    assert jnp.allclose(out, ref_out, atol=1e-1, rtol=5e-2), \
        float(jnp.max(jnp.abs(out - ref_out)))
    assert jnp.allclose(mu_out, ref_mu, atol=3e-2, rtol=3e-2), \
        float(jnp.max(jnp.abs(mu_out - ref_mu)))

    print("KERNEL_OK")
</pallas_src>

<mosaic_0001>
module attributes {stable_mosaic.version = 11 : i64} {
  func.func @emau_kernel(%arg0: i32, %arg1: memref<2x32x256xbf16, #tpu.memory_space<vmem>>, %arg2: memref<8x32xf32, #tpu.memory_space<vmem>>, %arg3: memref<32x32xbf16, #tpu.memory_space<vmem>>, %arg4: memref<32x1xf32, #tpu.memory_space<vmem>>, %arg5: memref<32x32xbf16, #tpu.memory_space<vmem>>, %arg6: memref<32x1xf32, #tpu.memory_space<vmem>>, %arg7: memref<32x1xf32, #tpu.memory_space<vmem>>, %arg8: memref<2x32x256xf32, #tpu.memory_space<vmem>>, %arg9: memref<2x8x32xf32, #tpu.memory_space<vmem>>) attributes {dimension_semantics = [#tpu.dimension_semantics<parallel>], iteration_bounds = array<i64: 2>, scalar_prefetch = 0 : i64, scratch_operands = 0 : i64, tpu.core_type = #tpu.core_type<tc>, window_params = [{transform_indices = @transform_0, window_bounds = array<i64: 2, 32, 256>}, {pipeline_mode = #tpu.pipeline_mode<synchronous>, transform_indices = @transform_1, window_bounds = array<i64: 8, 32>}, {pipeline_mode = #tpu.pipeline_mode<synchronous>, transform_indices = @transform_2, window_bounds = array<i64: 32, 32>}, {pipeline_mode = #tpu.pipeline_mode<synchronous>, transform_indices = @transform_3, window_bounds = array<i64: 32, 1>}, {pipeline_mode = #tpu.pipeline_mode<synchronous>, transform_indices = @transform_4, window_bounds = array<i64: 32, 32>}, {pipeline_mode = #tpu.pipeline_mode<synchronous>, transform_indices = @transform_5, window_bounds = array<i64: 32, 1>}, {pipeline_mode = #tpu.pipeline_mode<synchronous>, transform_indices = @transform_6, window_bounds = array<i64: 32, 1>}, {transform_indices = @transform_7, window_bounds = array<i64: 2, 32, 256>}, {transform_indices = @transform_8, window_bounds = array<i64: 2, 8, 32>}]} {
    %c0 = arith.constant 0 : index
    %c0_0 = arith.constant 0 : index
    %0 = vector.load %arg2[%c0, %c0_0] : memref<8x32xf32, #tpu.memory_space<vmem>>, vector<8x32xf32>
    %c0_1 = arith.constant 0 : index
    %c0_2 = arith.constant 0 : index
    %1 = vector.load %arg3[%c0_1, %c0_2] : memref<32x32xbf16, #tpu.memory_space<vmem>>, vector<32x32xbf16>
    %c0_3 = arith.constant 0 : index
    %c0_4 = arith.constant 0 : index
    %2 = vector.load %arg5[%c0_3, %c0_4] : memref<32x32xbf16, #tpu.memory_space<vmem>>, vector<32x32xbf16>
    %c0_5 = arith.constant 0 : index
    %c0_6 = arith.constant 0 : index
    %3 = vector.load %arg4[%c0_5, %c0_6] : memref<32x1xf32, #tpu.memory_space<vmem>>, vector<32x1xf32>
    %c0_7 = arith.constant 0 : index
    %c0_8 = arith.constant 0 : index
    %4 = vector.load %arg6[%c0_7, %c0_8] : memref<32x1xf32, #tpu.memory_space<vmem>>, vector<32x1xf32>
    %c0_9 = arith.constant 0 : index
    %c0_10 = arith.constant 0 : index
    %5 = vector.load %arg7[%c0_9, %c0_10] : memref<32x1xf32, #tpu.memory_space<vmem>>, vector<32x1xf32>
    %c0_i32 = arith.constant 0 : i32
    %c2_i32 = arith.constant 2 : i32
    %6 = arith.addi %c0_i32, %c2_i32 : i32
    %c1_i32 = arith.constant 1 : i32
    scf.for %arg10 = %c0_i32 to %6 step %c1_i32  : i32 {
      %7 = arith.index_cast %arg10 : i32 to index
      %c0_12 = arith.constant 0 : index
      %c0_13 = arith.constant 0 : index
      %8 = vector.load %arg1[%7, %c0_12, %c0_13] : memref<2x32x256xbf16, #tpu.memory_space<vmem>>, vector<1x32x256xbf16>
      %9 = vector.shape_cast %8 : vector<1x32x256xbf16> to vector<32x256xbf16>
      %cst = arith.constant dense<0.000000e+00> : vector<32x256xf32>
      %10 = tpu.matmul %1, %9, %cst {dimension_numbers = #tpu.dot_dimension_numbers<[1], [0], [0], [1], [0, 0, 1, 1], [], []>} : vector<32x32xbf16>, vector<32x256xbf16>, vector<32x256xf32> -> vector<32x256xf32>
      %11 = vector.broadcast %3 : vector<32x1xf32> to vector<32x256xf32>
      %12 = arith.addf %10, %11 : vector<32x256xf32>
      %13 = arith.truncf %12 : vector<32x256xf32> to vector<32x256xbf16>
      %14 = arith.truncf %0 : vector<8x32xf32> to vector<8x32xbf16>
      %cst_14 = arith.constant dense<0.000000e+00> : vector<8x256xf32>
      %15 = tpu.matmul %14, %13, %cst_14 {dimension_numbers = #tpu.dot_dimension_numbers<[1], [0], [0], [1], [0, 0, 1, 1], [], []>} : vector<8x32xbf16>, vector<32x256xbf16>, vector<8x256xf32> -> vector<8x256xf32>
      %cst_15 = arith.constant dense<0xFF800000> : vector<256xf32>
      %16 = vector.multi_reduction <maximumf>, %15, %cst_15 [0] : vector<8x256xf32> to vector<256xf32>
      %17 = vector.shape_cast %16 : vector<256xf32> to vector<1x256xf32>
      %18 = vector.broadcast %17 : vector<1x256xf32> to vector<8x256xf32>
      %19 = arith.subf %15, %18 : vector<8x256xf32>
      %20 = math.exp %19 : vector<8x256xf32>
      %cst_16 = arith.constant dense<0.000000e+00> : vector<256xf32>
      %21 = vector.multi_reduction <add>, %20, %cst_16 [0] : vector<8x256xf32> to vector<256xf32>
      %22 = vector.shape_cast %21 : vector<256xf32> to vector<1x256xf32>
      %23 = tpu.reciprocal %22 {approx = true} : vector<1x256xf32> -> vector<1x256xf32>
      %24 = vector.broadcast %23 : vector<1x256xf32> to vector<8x256xf32>
      %25 = arith.mulf %20, %24 : vector<8x256xf32>
      %cst_17 = arith.constant dense<0.000000e+00> : vector<8xf32>
      %26 = vector.multi_reduction <add>, %25, %cst_17 [1] : vector<8x256xf32> to vector<8xf32>
      %27 = vector.shape_cast %26 : vector<8xf32> to vector<8x1xf32>
      %cst_18 = arith.constant 9.99999997E-7 : f32
      %28 = vector.broadcast %cst_18 : f32 to vector<8x1xf32>
      %29 = arith.addf %28, %27 : vector<8x1xf32>
      %30 = tpu.reciprocal %29 : vector<8x1xf32> -> vector<8x1xf32>
      %31 = vector.broadcast %30 : vector<8x1xf32> to vector<8x256xf32>
      %32 = arith.mulf %25, %31 : vector<8x256xf32>
      %33 = arith.truncf %32 : vector<8x256xf32> to vector<8x256xbf16>
      %cst_19 = arith.constant dense<0.000000e+00> : vector<8x32xf32>
      %34 = tpu.matmul %33, %13, %cst_19 {dimension_numbers = #tpu.dot_dimension_numbers<[1], [1], [0], [0], [0, 0, 1, 0], [], []>} : vector<8x256xbf16>, vector<32x256xbf16>, vector<8x32xf32> -> vector<8x32xf32>
      %35 = arith.mulf %34, %34 : vector<8x32xf32>
      %cst_20 = arith.constant dense<0.000000e+00> : vector<8xf32>
      %36 = vector.multi_reduction <add>, %35, %cst_20 [1] : vector<8x32xf32> to vector<8xf32>
      %37 = vector.shape_cast %36 : vector<8xf32> to vector<8x1xf32>
      %38 = math.sqrt %37 : vector<8x1xf32>
      %cst_21 = arith.constant 9.99999997E-7 : f32
      %39 = vector.broadcast %cst_21 : f32 to vector<8x1xf32>
      %40 = arith.addf %39, %38 : vector<8x1xf32>
      %41 = tpu.reciprocal %40 : vector<8x1xf32> -> vector<8x1xf32>
      %42 = vector.broadcast %41 : vector<8x1xf32> to vector<8x32xf32>
      %43 = arith.mulf %34, %42 : vector<8x32xf32>
      %44 = arith.truncf %43 : vector<8x32xf32> to vector<8x32xbf16>
      %cst_22 = arith.constant dense<0.000000e+00> : vector<8x256xf32>
      %45 = tpu.matmul %44, %13, %cst_22 {dimension_numbers = #tpu.dot_dimension_numbers<[1], [0], [0], [1], [0, 0, 1, 1], [], []>} : vector<8x32xbf16>, vector<32x256xbf16>, vector<8x256xf32> -> vector<8x256xf32>
      %cst_23 = arith.constant dense<0xFF800000> : vector<256xf32>
      %46 = vector.multi_reduction <maximumf>, %45, %cst_23 [0] : vector<8x256xf32> to vector<256xf32>
      %47 = vector.shape_cast %46 : vector<256xf32> to vector<1x256xf32>
      %48 = vector.broadcast %47 : vector<1x256xf32> to vector<8x256xf32>
      %49 = arith.subf %45, %48 : vector<8x256xf32>
      %50 = math.exp %49 : vector<8x256xf32>
      %cst_24 = arith.constant dense<0.000000e+00> : vector<256xf32>
      %51 = vector.multi_reduction <add>, %50, %cst_24 [0] : vector<8x256xf32> to vector<256xf32>
      %52 = vector.shape_cast %51 : vector<256xf32> to vector<1x256xf32>
      %53 = tpu.reciprocal %52 {approx = true} : vector<1x256xf32> -> vector<1x256xf32>
      %54 = vector.broadcast %53 : vector<1x256xf32> to vector<8x256xf32>
      %55 = arith.mulf %50, %54 : vector<8x256xf32>
      %cst_25 = arith.constant dense<0.000000e+00> : vector<8xf32>
      %56 = vector.multi_reduction <add>, %55, %cst_25 [1] : vector<8x256xf32> to vector<8xf32>
      %57 = vector.shape_cast %56 : vector<8xf32> to vector<8x1xf32>
      %cst_26 = arith.constant 9.99999997E-7 : f32
      %58 = vector.broadcast %cst_26 : f32 to vector<8x1xf32>
      %59 = arith.addf %58, %57 : vector<8x1xf32>
      %60 = tpu.reciprocal %59 : vector<8x1xf32> -> vector<8x1xf32>
      %61 = vector.broadcast %60 : vector<8x1xf32> to vector<8x256xf32>
      %62 = arith.mulf %55, %61 : vector<8x256xf32>
      %63 = arith.truncf %62 : vector<8x256xf32> to vector<8x256xbf16>
      %cst_27 = arith.constant dense<0.000000e+00> : vector<8x32xf32>
      %64 = tpu.matmul %63, %13, %cst_27 {dimension_numbers = #tpu.dot_dimension_numbers<[1], [1], [0], [0], [0, 0, 1, 0], [], []>} : vector<8x256xbf16>, vector<32x256xbf16>, vector<8x32xf32> -> vector<8x32xf32>
      %65 = arith.mulf %64, %64 : vector<8x32xf32>
      %cst_28 = arith.constant dense<0.000000e+00> : vector<8xf32>
      %66 = vector.multi_reduction <add>, %65, %cst_28 [1] : vector<8x32xf32> to vector<8xf32>
      %67 = vector.shape_cast %66 : vector<8xf32> to vector<8x1xf32>
      %68 = math.sqrt %67 : vector<8x1xf32>
      %cst_29 = arith.constant 9.99999997E-7 : f32
      %69 = vector.broadcast %cst_29 : f32 to vector<8x1xf32>
      %70 = arith.addf %69, %68 : vector<8x1xf32>
      %71 = tpu.reciprocal %70 : vector<8x1xf32> -> vector<8x1xf32>
      %72 = vector.broadcast %71 : vector<8x1xf32> to vector<8x32xf32>
      %73 = arith.mulf %64, %72 : vector<8x32xf32>
      %74 = arith.truncf %73 : vector<8x32xf32> to vector<8x32xbf16>
      %cst_30 = arith.constant dense<0.000000e+00> : vector<8x256xf32>
      %75 = tpu.matmul %74, %13, %cst_30 {dimension_numbers = #tpu.dot_dimension_numbers<[1], [0], [0], [1], [0, 0, 1, 1], [], []>} : vector<8x32xbf16>, vector<32x256xbf16>, vector<8x256xf32> -> vector<8x256xf32>
      %cst_31 = arith.constant dense<0xFF800000> : vector<256xf32>
      %76 = vector.multi_reduction <maximumf>, %75, %cst_31 [0] : vector<8x256xf32> to vector<256xf32>
      %77 = vector.shape_cast %76 : vector<256xf32> to vector<1x256xf32>
      %78 = vector.broadcast %77 : vector<1x256xf32> to vector<8x256xf32>
      %79 = arith.subf %75, %78 : vector<8x256xf32>
      %80 = math.exp %79 : vector<8x256xf32>
      %cst_32 = arith.constant dense<0.000000e+00> : vector<256xf32>
      %81 = vector.multi_reduction <add>, %80, %cst_32 [0] : vector<8x256xf32> to vector<256xf32>
      %82 = vector.shape_cast %81 : vector<256xf32> to vector<1x256xf32>
      %83 = tpu.reciprocal %82 {approx = true} : vector<1x256xf32> -> vector<1x256xf32>
      %84 = vector.broadcast %83 : vector<1x256xf32> to vector<8x256xf32>
      %85 = arith.mulf %80, %84 : vector<8x256xf32>
      %cst_33 = arith.constant dense<0.000000e+00> : vector<8xf32>
      %86 = vector.multi_reduction <add>, %85, %cst_33 [1] : vector<8x256xf32> to vector<8xf32>
      %87 = vector.shape_cast %86 : vector<8xf32> to vector<8x1xf32>
      %cst_34 = arith.constant 9.99999997E-7 : f32
      %88 = vector.broadcast %cst_34 : f32 to vector<8x1xf32>
      %89 = arith.addf %88, %87 : vector<8x1xf32>
      %90 = tpu.reciprocal %89 : vector<8x1xf32> -> vector<8x1xf32>
      %91 = vector.broadcast %90 : vector<8x1xf32> to vector<8x256xf32>
      %92 = arith.mulf %85, %91 : vector<8x256xf32>
      %93 = arith.truncf %92 : vector<8x256xf32> to vector<8x256xbf16>
      %cst_35 = arith.constant dense<0.000000e+00> : vector<8x32xf32>
      %94 = tpu.matmul %93, %13, %cst_35 {dimension_numbers = #tpu.dot_dimension_numbers<[1], [1], [0], [0], [0, 0, 1, 0], [], []>} : vector<8x256xbf16>, vector<32x256xbf16>, vector<8x32xf32> -> vector<8x32xf32>
      %95 = arith.mulf %94, %94 : vector<8x32xf32>
      %cst_36 = arith.constant dense<0.000000e+00> : vector<8xf32>
      %96 = vector.multi_reduction <add>, %95, %cst_36 [1] : vector<8x32xf32> to vector<8xf32>
      %97 = vector.shape_cast %96 : vector<8xf32> to vector<8x1xf32>
      %98 = math.sqrt %97 : vector<8x1xf32>
      %cst_37 = arith.constant 9.99999997E-7 : f32
      %99 = vector.broadcast %cst_37 : f32 to vector<8x1xf32>
      %100 = arith.addf %99, %98 : vector<8x1xf32>
      %101 = tpu.reciprocal %100 : vector<8x1xf32> -> vector<8x1xf32>
      %102 = vector.broadcast %101 : vector<8x1xf32> to vector<8x32xf32>
      %103 = arith.mulf %94, %102 : vector<8x32xf32>
      %104 = arith.index_cast %arg10 : i32 to index
      %c0_38 = arith.constant 0 : index
      %c0_39 = arith.constant 0 : index
      %105 = vector.load %arg9[%104, %c0_38, %c0_39] : memref<2x8x32xf32, #tpu.memory_space<vmem>>, vector<1x8x32xf32>
      %106 = vector.shape_cast %105 : vector<1x8x32xf32> to vector<8x32xf32>
      %107 = vector.shape_cast %103 : vector<8x32xf32> to vector<1x8x32xf32>
      tpu.vector_store %arg9[%104, %c0_38, %c0_39], %107 {strides = array<i32>} : memref<2x8x32xf32, #tpu.memory_space<vmem>>, vector<1x8x32xf32>,
      %108 = arith.truncf %103 : vector<8x32xf32> to vector<8x32xbf16>
      %109 = arith.truncf %85 : vector<8x256xf32> to vector<8x256xbf16>
      %cst_40 = arith.constant dense<0.000000e+00> : vector<32x256xf32>
      %110 = tpu.matmul %108, %109, %cst_40 {dimension_numbers = #tpu.dot_dimension_numbers<[0], [0], [1], [1], [0, 1, 1, 1], [], []>} : vector<8x32xbf16>, vector<8x256xbf16>, vector<32x256xf32> -> vector<32x256xf32>
      %cst_41 = arith.constant 0.000000e+00 : f32
      %111 = vector.broadcast %cst_41 : f32 to vector<32x256xf32>
      %112 = arith.maximumf %110, %111 : vector<32x256xf32>
      %113 = arith.truncf %112 : vector<32x256xf32> to vector<32x256xbf16>
      %cst_42 = arith.constant dense<0.000000e+00> : vector<32x256xf32>
      %114 = tpu.matmul %2, %113, %cst_42 {dimension_numbers = #tpu.dot_dimension_numbers<[1], [0], [0], [1], [0, 0, 1, 1], [], []>} : vector<32x32xbf16>, vector<32x256xbf16>, vector<32x256xf32> -> vector<32x256xf32>
      %115 = vector.broadcast %4 : vector<32x1xf32> to vector<32x256xf32>
      %116 = arith.mulf %114, %115 : vector<32x256xf32>
      %117 = vector.broadcast %5 : vector<32x1xf32> to vector<32x256xf32>
      %118 = arith.addf %116, %117 : vector<32x256xf32>
      %119 = arith.extf %9 : vector<32x256xbf16> to vector<32x256xf32>
      %120 = arith.addf %118, %119 : vector<32x256xf32>
      %cst_43 = arith.constant 0.000000e+00 : f32
      %121 = vector.broadcast %cst_43 : f32 to vector<32x256xf32>
      %122 = arith.maximumf %120, %121 : vector<32x256xf32>
      %123 = arith.index_cast %arg10 : i32 to index
      %c0_44 = arith.constant 0 : index
      %c0_45 = arith.constant 0 : index
      %124 = vector.load %arg8[%123, %c0_44, %c0_45] : memref<2x32x256xf32, #tpu.memory_space<vmem>>, vector<1x32x256xf32>
      %125 = vector.shape_cast %124 : vector<1x32x256xf32> to vector<32x256xf32>
      %126 = vector.shape_cast %122 : vector<32x256xf32> to vector<1x32x256xf32>
      tpu.vector_store %arg8[%123, %c0_44, %c0_45], %126 {strides = array<i32>} : memref<2x32x256xf32, #tpu.memory_space<vmem>>, vector<1x32x256xf32>,
    }
    %c2_i32_11 = arith.constant 2 : i32
    return
  }
  func.func @transform_0(%arg0: i32) -> (i32, i32, i32) {
    %c0_i32 = arith.constant 0 : i32
    %c0_i32_0 = arith.constant 0 : i32
    %c0_i32_1 = arith.constant 0 : i32
    return %arg0, %c0_i32, %c0_i32_0 : i32, i32, i32
  }
  func.func @transform_1(%arg0: i32) -> (i32, i32) {
    %c0_i32 = arith.constant 0 : i32
    %c0_i32_0 = arith.constant 0 : i32
    %c0_i32_1 = arith.constant 0 : i32
    return %c0_i32, %c0_i32_0 : i32, i32
  }
  func.func @transform_2(%arg0: i32) -> (i32, i32) {
    %c0_i32 = arith.constant 0 : i32
    %c0_i32_0 = arith.constant 0 : i32
    %c0_i32_1 = arith.constant 0 : i32
    return %c0_i32, %c0_i32_0 : i32, i32
  }
  func.func @transform_3(%arg0: i32) -> (i32, i32) {
    %c0_i32 = arith.constant 0 : i32
    %c0_i32_0 = arith.constant 0 : i32
    %c0_i32_1 = arith.constant 0 : i32
    return %c0_i32, %c0_i32_0 : i32, i32
  }
  func.func @transform_4(%arg0: i32) -> (i32, i32) {
    %c0_i32 = arith.constant 0 : i32
    %c0_i32_0 = arith.constant 0 : i32
    %c0_i32_1 = arith.constant 0 : i32
    return %c0_i32, %c0_i32_0 : i32, i32
  }
  func.func @transform_5(%arg0: i32) -> (i32, i32) {
    %c0_i32 = arith.constant 0 : i32
    %c0_i32_0 = arith.constant 0 : i32
    %c0_i32_1 = arith.constant 0 : i32
    return %c0_i32, %c0_i32_0 : i32, i32
  }
  func.func @transform_6(%arg0: i32) -> (i32, i32) {
    %c0_i32 = arith.constant 0 : i32
    %c0_i32_0 = arith.constant 0 : i32
    %c0_i32_1 = arith.constant 0 : i32
    return %c0_i32, %c0_i32_0 : i32, i32
  }
  func.func @transform_7(%arg0: i32) -> (i32, i32, i32) {
    %c0_i32 = arith.constant 0 : i32
    %c0_i32_0 = arith.constant 0 : i32
    %c0_i32_1 = arith.constant 0 : i32
    return %arg0, %c0_i32, %c0_i32_0 : i32, i32, i32
  }
  func.func @transform_8(%arg0: i32) -> (i32, i32, i32) {
    %c0_i32 = arith.constant 0 : i32
    %c0_i32_0 = arith.constant 0 : i32
    %c0_i32_1 = arith.constant 0 : i32
    return %arg0, %c0_i32, %c0_i32_0 : i32, i32, i32
  }
}

</mosaic_0001>

<bundles_post_ra>
// kernel: tpu_custom_call.1
= control target key start
LH: loop header
LB: loop body
LE: loop exit
PB: predicated region body
PF: predicated region fallthrough
CT: control target
= control target key end

     0   :  { %s2051_s0 = inlined_call_operand.hbm [shape: bf16[4,32,256], index: 0, kind: input, shape index: {}]   ;;  %s2052_s1 = inlined_call_operand.vmem [shape: f32[8,32], index: 1, kind: input, shape index: {}]   ;;  %s2053_s2 = inlined_call_operand.vmem [shape: bf16[32,32], index: 2, kind: input, shape index: {}]   ;;  %s2054_s3 = inlined_call_operand.vmem [shape: f32[32,1], index: 3, kind: input, shape index: {}]   ;;  %s2055_s4 = inlined_call_operand.vmem [shape: bf16[32,32], index: 4, kind: input, shape index: {}]   ;;  %s2056_s5 = inlined_call_operand.vmem [shape: f32[32,1], index: 5, kind: input, shape index: {}]   ;;  %s2057_s6 = inlined_call_operand.vmem [shape: f32[32,1], index: 6, kind: input, shape index: {}]   ;;  %s2058_s7 = inlined_call_operand.hbm [shape: f32[4,32,256], index: 7, kind: output, shape index: {0}]   ;;  %s2059_s8 = inlined_call_operand.hbm [shape: f32[4,8,32], index: 8, kind: output, shape index: {1}]  }
   0x1   :  { %2061 = sst [smem:[#allocation13_spill]] %s2051_s0 }
   0x2   :  { %2062 = sst [smem:[#allocation14_spill]] %s2052_s1 }
   0x3   :  { %2063 = sst [smem:[#allocation15_spill]] %s2053_s2 }
   0x4   :  { %14 = vsyncpa [#allocation3], 0 }
   0x5   :  { %16 = vsyncpa [#allocation3 + $0x1], 0 }
   0x6   :  { %17 = vsyncpa [#allocation4], 0 }
   0x7   :  { %19 = vsyncpa [#allocation4 + $0x1], 0 }
   0x8   :  { %20 = vsyncpa [#allocation7], 0 }
   0x9   :  { %22 = vsyncpa [#allocation7 + $0x1], 0  ;;  %s1681_s27 = smov 0   ;;  %s1683_s28 = smov 0  }
   0xa   :  { %s1685_s29 = smov 0   ;;  %s1687_s30 = smov 0  }
   0xb LB: > { %2064 = sst [smem:[#allocation11_spill]] %s1619_s29  ;;  %s1702_s9 = sadd.s32 4294967295, %s1623_s30   ;;  %s1623_s30 = sphi %s1687_s30, %s2079_s30   ;;  %s1619_s29 = sphi %s1685_s29, %s2076_s29   ;;  %s1615_s28 = sphi %s1683_s28, %s2078_s28   ;;  %s1611_s27 = sphi %s1681_s27, %s2077_s27  }
   0xc   : > { %s1292_s10 = sadd.s32 4294967294, %s1623_s30   ;;  %s1706_s11 = sadd.s32 1, %s1623_s30  }
   0xd   : > { %s35_s12 = sadd.s32 1, %s1619_s29  ;;  %s32_s13 = ssub.s32 %s1623_s30, %s1706_s11 }
   0xe   : > { %p42_p0 = scmp.ne.s32.totalorder %s1619_s29, %s1615_s28  ;;  %p33_p1 = scmp.eq.s32.totalorder %s32_s13, 0 }
   0xf   : > { %p43_p2 = scmp.eq.s32.totalorder %s1623_s30, 0  ;;  %p48_p3 = scmp.ne.s32.totalorder %s1615_s28, %s1611_s27 }
  0x10   : > { %p49_p4 = scmp.eq.s32.totalorder %s1702_s9, 0  ;;  %p198_p7 = scmp.eq.s32.totalorder %s1702_s9, 1 }
  0x11   : > { %s1718_s14 = scalar_select %p33_p1, %s1619_s29, %s35_s12  }
  0x12   : > { %p1720_p5 = por %p43_p2, %p42_p0  ;;  %p1724_p6 = por %p49_p4, %p48_p3 }
  0x13   : > { %2065 = sst [smem:[#allocation12_spill]] %s1718_s14  ;;  %p204_p8 = scmp.eq.s32.totalorder %s1292_s10, 1 }
  0x14   : > { %p1397_p10 = scmp.lt.s32.totalorder %s1623_s30, 2  ;;  %p1731_p11 = por %p198_p7, %p42_p0 }
  0x15   : > { %p1735_p12 = por %p204_p8, %p48_p3  ;;  %s268_s19 = sand.u32 1, %s1619_s29  }
  0x16   : > { %s1366_s20 = sshll.u32 %s1623_s30, 6  ;;  %s1295_s21 = sshll.u32 %s268_s19, 6 }
  0x17   : > { %s2070_s0 = sld [smem:[#allocation13_spill]]  ;;  %s272_s26 = scalar_lea.vmem [#allocation2], %s1295_s21 }
  0x18   : > { %s281_s10 = sshll.u32 %s272_s26, 4  ;;  %p1746_p13 = pnand %p1397_p10, %p1720_p5  ;;  %s282_s10 = int_to_ptr.vmem [resolvable:$true] %s281_s10 }
  0x19   : > { %p1299_p0 = scmp.ge.s32.totalorder %s1623_s30, 1  ;;  %p289_p1 = scmp.lt.s32.totalorder %s1623_s30, 3 }
  0x1a   : > { %s269_s13 = scalar_lea.sflag [#allocation3], %s268_s19  ;;  %p1495_p3 = pneg %p1746_p13 }
  0x1d   : > { %s278_s24 = scalar_lea.hbm %s2070_s0, %s1366_s20  ;;  %s1498_s15 = scalar_lea.hbm %s2070_s0, 128 }
  0x1e   : > { %s279_s25 = sshll.u32 %s278_s24, 4  ;;  %s280_s25 = int_to_ptr.hbm [resolvable:$true] %s279_s25 }
  0x1f   : > { %s1491_s14 = sshra.s32 %s280_s25, 4  ;;  %s1492_s14 = int_to_ptr.hbm [resolvable:$true] %s1491_s14 }
  0x20   : > { %s1493_s29 = scalar_lea.hbm %s1492_s14, 64  ;;  %p1499_p5 = scmp.lt.s32.totalorder %s1492_s14, %s2070_s0 }
  0x21   : > { %p1494_p2 = scmp.ne.s32.totalorder %s1492_s14, %s1493_s29  ;;  %p1500_p8 = scmp.lt.s32.totalorder %s1498_s15, %s1493_s29 }
  0x23   : > { %p1496_p4 = pnand %p1495_p3, %p1494_p2  ;;  %p1501_p10 = por %p1500_p8, %p1499_p5 }
  0x25   : > { %p1497_p7 = pneg %p1496_p4 }
  0x27   : > { %p1502_p9 = pnand %p1501_p10, %p1497_p7 }
  0x29   : > { %1505 = shalt.err (!%p1502_p9)
}
  0x2a   : > { %s1629_s19 = smov 128   ;;  %s1630_s24 = smov 8  }
  0x2b   : > { %1389 = dma.hbm_to_vmem [thread:$0]  (!%p1746_p13), %s280_s25, 1024, %s282_s10, %s269_s13, %s1629_s19, %s1629_s19, %s1630_s24  }
  0x2c   : > { %p290_p2 = pnand %p1299_p0, %p289_p1 }
  0x2d   : > { %s1767_s26 = sand.u32 (!%p290_p2), 1, %s1615_s28  }
  0x2e   : > { %293 = sbr.rel (%p290_p2) target bundleno = 2583 (0xa17), region = 48  ;;  %s1300_s29 = sshll.u32 (!%p290_p2), %s1767_s26, 6 }
  0x2f   : > { %s296_s14 = scalar_lea.sflag (!%p290_p2), [#allocation3], %s1767_s26  ;;  %s1771_s20 = scalar_lea.vmem (!%p290_p2), [#allocation2], %s1300_s29 }
  0x33   : > { %1598 = dma.done.wait (%p1724_p6), %s296_s14, 1024  }
  0x34   : > { %1600 = vsyncadd (%p1724_p6), %s296_s14, 4294966272  ;;  %s1301_s25 = sshll.u32 %s1767_s26, 7  ;;  %s1302_s10 = sshll.u32 %s1767_s26, 4  ;;  %v1807_v5 = vld [vmem:[%s2055_s4] sm:$0xf]  ;;  %v1832_v10 = vld [vmem:[%s2054_s3 + $0x8] sm:$0xff] }
  0x35   : > { %s2072_s1 = sld [smem:[#allocation14_spill]]  ;;  %v1812_v6 = vld [vmem:[%s2055_s4] sm:$0xf0]  ;;  %v1817_v7 = vld [vmem:[%s2055_s4 + $0x8] sm:$0xf]  ;;  %v1837_v11 = vld [vmem:[%s2054_s3 + $0x10] sm:$0xff] }
  0x36   : > { %s2073_s2 = sld [smem:[#allocation15_spill]]  ;;  %v1822_v8 = vld [vmem:[%s2055_s4 + $0x8] sm:$0xf0]  ;;  %v1827_v9 = vld [vmem:[%s2054_s3] sm:$0xff]  ;;  %v1842_v12 = vld [vmem:[%s2054_s3 + $0x18] sm:$0xff]  ;;  %s1884_s29 = scalar_lea.vmem [#allocation5], %s1301_s25 }
  0x37   : > { %v1847_v13 = vld [vmem:[%s2056_s5] sm:$0xff]  ;;  %v1852_v14 = vld [vmem:[%s2056_s5 + $0x8] sm:$0xff]  ;;  %v1857_v15 = vld [vmem:[%s2056_s5 + $0x10] sm:$0xff]  ;;  %s1886_s14 = scalar_lea.vmem [#allocation6], %s1302_s10  ;;  %s1888_s12 = smov 0  }
  0x38   : > { %v1862_v16 = vld [vmem:[%s2056_s5 + $0x18] sm:$0xff]  ;;  %v1867_v17 = vld [vmem:[%s2057_s6] sm:$0xff]  ;;  %v1872_v18 = vld [vmem:[%s2057_s6 + $0x8] sm:$0xff] }
  0x39   : > { %v1877_v19 = vld [vmem:[%s2057_s6 + $0x10] sm:$0xff]  ;;  %v1882_v20 = vld [vmem:[%s2057_s6 + $0x18] sm:$0xff] }
  0x3b   : > { %v1782_v0 = vld [vmem:[%s2072_s1] sm:$0xff] }
  0x3c   : > { %v1787_v1 = vld [vmem:[%s2073_s2] sm:$0xf]  ;;  %v1792_v2 = vld [vmem:[%s2073_s2] sm:$0xf0]  ;;  %v1797_v3 = vld [vmem:[%s2073_s2 + $0x8] sm:$0xf] }
  0x3d   : > { %v1802_v4 = vld [vmem:[%s2073_s2 + $0x8] sm:$0xf0] }
  0x3e LB: >> { %v1631_v21 = vmov 0   ;;  %s1371_s13 = sshll.u32 %s1627_s12, 5  ;;  %v1308_v34 = vor.u32 %v1792_v2, %v1787_v1  ;;  %vm426_vm0 = vcmask 261120   ;;  %v1312_v35 = vor.u32 %v1802_v4, %v1797_v3  ;;  %s1303_s10 = sshll.u32 %s1627_s12, 3  ;;  %s1627_s12 = sphi %s1888_s12, %s368_s12  }
  0x3f   : >> { %1447 = vset.pattern.permute.xlu1 %v1631_v21  ;;  %1446 = vset.pattern.permute.xlu0 %v1631_v21  ;;  %s1899_s25 = scalar_lea.vmem %s1771_s20, %s1371_s13 [#allocation2]  ;;  %v475_v60 = vpack.c.bf16 %v1782_v0, %v1782_v0  ;;  %s907_s21 = scalar_lea.vmem %s1886_s14, %s1303_s10 [#allocation6] }
  0x40   : >> { %378 = vperm.xlu1 %1447, %v1827_v9   ;;  %388 = vperm.xlu0 %1446, %v1837_v11   ;;  %v1323_v22 = vld [vmem:[%s1899_s25 + $0x10] sm:$0xf]  ;;  %v1375_v23 = vld [vmem:[%s1899_s25 + $0x14] sm:$0xf0]  ;;  %v1374_v24 = vld [vmem:[%s1899_s25 + $0x14] sm:$0xf] }
  0x41   : >> { %v1324_v25 = vor.u32 %v1375_v23, %v1323_v22  ;;  %v1325_v26 = vld [vmem:[%s1899_s25 + $0x18] sm:$0xf0]  ;;  %v1315_v27 = vld [vmem:[%s1899_s25] sm:$0xf]  ;;  %v1373_v28 = vld [vmem:[%s1899_s25 + $0x4] sm:$0xf0] }
  0x42   : >> { %v1328_v29 = vor.u32 %v1374_v24, %v1325_v26  ;;  %v1372_v30 = vld [vmem:[%s1899_s25 + $0x4] sm:$0xf]  ;;  %v1317_v31 = vld [vmem:[%s1899_s25 + $0x8] sm:$0xf0]  ;;  %v1316_v32 = vor.u32 %v1373_v28, %v1315_v27  ;;  %s1376_s15 = sshll.u32 %s1627_s12, 6  ;;  %s368_s12 = sadd.s32 1, %s1627_s12  }
  0x43   : >> { %439 = vmatpush.bf16.msra.mxu0 %v1324_v25  ;;  %v1320_v33 = vor.u32 %v1372_v30, %v1317_v31  ;;  %s1985_s22 = scalar_lea.vmem %s1884_s29, %s1376_s15 [#allocation5]  ;;  %p365_p6 = scmp.ge.s32.totalorder %s368_s12, 2  }
  0x44   : >> { %458 = vmatpush.bf16.msra.mxu1 %v1328_v29  ;;  %s1378_s23 = sshll.u32 (%p365_p6), %s1702_s9, 7  ;;  %s1155_s13 = sshll.u32 (%p365_p6), %s1884_s29, 4  ;;  %s1156_s13 = int_to_ptr.vmem [resolvable:$true] %s1155_s13 }
  0x45   : > { %s1154_s24 = scalar_lea.hbm (%p365_p6), %s2058_s7, %s1378_s23  ;;  %s1137_s10 = scalar_lea.sflag (%p365_p6), [#allocation4], %s1767_s26 }
  0x47   : >> { %440 = vmatpush.bf16.msra.mxu0 %v1316_v32 }
  0x48   : >> { %383 = vperm.xlu1 %1447, %v1832_v10   ;;  %393 = vperm.xlu0 %1446, %v1842_v12  }
  0x49   : >> { %459 = vmatpush.bf16.msra.mxu1 %v1320_v33 }
  0x4a   : >> { %1329 = vmatmul.msk.bf16.vlgmr.msra.gmra.mxu0 %vm426_vm0, %v1308_v34 }
  0x4c   : >> { %1331 = vmatmul.msk.bf16.vlgmr.msra.gmra.mxu1 %vm426_vm0, %v1308_v34 }
  0x5a   : >> { %1330 = vmatmul.msk.bf16.gmra.mxu0 %vm426_vm0, %v1312_v35 }
  0x5c   : >> { %1332 = vmatmul.msk.bf16.gmra.mxu1 %vm426_vm0, %v1312_v35 }
  0xb2   : >> { %v379_v40 = vpop.permute.xlu1 %378  ;;  %v389_v41 = vpop.permute.xlu0 %388 }
  0xba   : >> { %v384_v44 = vpop.permute.xlu1 %383  ;;  %v394_v45 = vpop.permute.xlu0 %393 }
  0xc7   : >> { %v442_v36 = vpop.f32.mrf.mxu0 }
  0xc8   : >> { %v443_v56 = vadd.f32 %v442_v36, %v379_v40 }
  0xc9   : >> { %v461_v37 = vpop.f32.mrf.mxu1 }
  0xca   : >> { %v462_v57 = vadd.f32 %v461_v37, %v379_v40 }
  0xcf   : >> { %v444_v38 = vpop.f32.mrf.mxu0 }
  0xd0   : >> { %v445_v52 = vadd.f32 %v444_v38, %v384_v44 }
  0xd1   : >> { %v463_v39 = vpop.f32.mrf.mxu1 }
  0xd2   : >> { %v464_v54 = vadd.f32 %v463_v39, %v384_v44  ;;  %v1927_v58 = vpack.c.bf16 %v445_v52, %v443_v56 }
  0xd4   : >> { %v1929_v59 = vpack.c.bf16 %v464_v54, %v462_v57 }
  0xd7   : >> { %v447_v42 = vpop.f32.mrf.mxu0 }
  0xd8   : >> { %v448_v47 = vadd.f32 %v447_v42, %v389_v41 }
  0xd9   : >> { %v466_v43 = vpop.f32.mrf.mxu1 }
  0xda   : >> { %v467_v50 = vadd.f32 %v466_v43, %v389_v41 }
  0xdf   : >> { %v449_v46 = vpop.f32.mrf.mxu0 }
  0xe0   : >> { %v450_v48 = vadd.f32 %v449_v46, %v394_v45 }
  0xe1   : >> { %v468_v49 = vpop.f32.mrf.mxu1 }
  0xe2   : >> { %v469_v51 = vadd.f32 %v468_v49, %v394_v45  ;;  %v1919_v53 = vpack.c.bf16 %v450_v48, %v448_v47 }
  0xe4   : >> { %v1921_v55 = vpack.c.bf16 %v469_v51, %v467_v50  ;;  %485 = vmatpush.bf16.msra.mxu2 %v1919_v53  ;;  %629 = vmatpush.bf16.msrb.mxu0 %v1919_v53 }
  0xe6   : >> { %498 = vmatpush.bf16.msra.mxu3 %v1921_v55  ;;  %642 = vmatpush.bf16.msrb.mxu1 %v1921_v55 }
  0xe8   : >> { %486 = vmatpush.bf16.msra.mxu2 %v1927_v58  ;;  %630 = vmatpush.bf16.msrb.mxu0 %v1927_v58 }
  0xea   : >> { %499 = vmatpush.bf16.msra.mxu3 %v1929_v59  ;;  %643 = vmatpush.bf16.msrb.mxu1 %v1929_v59 }
  0xeb   : >> { %1333 = vmatmul.msk.bf16.vlgmr.msra.gmra.mxu2 %vm426_vm0, %v475_v60 }
  0xec   : >> { %567 = vmatpush.bf16.xpose.msrb.mxu2 %v1919_v53  ;;  %773 = vmatpush.bf16.msra.mxu0 %v1919_v53 }
  0xed   : >> { %1334 = vmatmul.msk.bf16.vlgmr.msra.gmra.mxu3 %vm426_vm0, %v475_v60 }
  0xee   : >> { %580 = vmatpush.bf16.xpose.msrb.mxu3 %v1921_v55  ;;  %786 = vmatpush.bf16.msra.mxu1 %v1921_v55 }
  0xf0   : >> { %774 = vmatpush.bf16.msra.mxu0 %v1927_v58 }
  0xf2   : >> { %787 = vmatpush.bf16.msra.mxu1 %v1929_v59 }
  0xf4   : >> { %568 = vmatpush.bf16.xpose.msrb.mxu2 %v1927_v58 }
  0xf6   : >> { %581 = vmatpush.bf16.xpose.msrb.mxu3 %v1929_v59 }
  0xfc   : >> { %711 = vmatpush.bf16.xpose.msra.mxu2 %v1919_v53 }
  0xfe   : >> { %724 = vmatpush.bf16.xpose.msra.mxu3 %v1921_v55 }
 0x104   : >> { %712 = vmatpush.bf16.xpose.msra.mxu2 %v1927_v58 }
 0x106   : >> { %725 = vmatpush.bf16.xpose.msra.mxu3 %v1929_v59 }
 0x16e   : >> { %v488_v61 = vpop.f32.mrf.mxu2 }
 0x16f   : >> { %v505_v63 = vrot.slane %v488_v61, 4 }
 0x170   : >> { %v501_v62 = vpop.f32.mrf.mxu3 }
 0x171   : >> { %v511_v22 = vrot.slane %v501_v62, 4  ;;  %v506_v23 = vmax.f32 %v488_v61, %v505_v63 }
 0x173   : >> { %v512_v24 = vmax.f32 %v501_v62, %v511_v22  ;;  %v507_v25 = vrot.slane %v506_v23, 2 }
 0x175   : >> { %v513_v26 = vrot.slane %v512_v24, 2  ;;  %v508_v27 = vmax.f32 %v506_v23, %v507_v25 }
 0x176   : >> { %v490_v29 = vpop.f32.mrf.mxu2 }
 0x177   : >> { %v514_v28 = vmax.f32 %v512_v24, %v513_v26  ;;  %v509_v31 = vrot.slane %v508_v27, 1 }
 0x178   : >> { %v503_v30 = vpop.f32.mrf.mxu3 }
 0x179   : >> { %v515_v32 = vrot.slane %v514_v28, 1  ;;  %v510_v33 = vmax.f32 %v508_v27, %v509_v31 }
 0x17b   : >> { %v516_v34 = vmax.f32 %v514_v28, %v515_v32  ;;  %v517_v35 = vsub.f32 %v488_v61, %v510_v33 }
 0x17d   : >> { %v518_v36 = vsub.f32 %v501_v62, %v516_v34  ;;  %v519_v37 = vmul.f32 1.442695, %v517_v35 }
 0x17f   : >> { %v521_v38 = vmul.f32 1.442695, %v518_v36  ;;  %1449 = vpow2.f32 %v519_v37 }
 0x181   : >> { %1451 = vpow2.f32 %v521_v38 }
 0x185   : >> { %v1450_v39 = vpop.eup %1449 }
 0x186   : >> { %v523_v41 = vrot.slane %v1450_v39, 4 }
 0x187   : >> { %v1452_v40 = vpop.eup %1451 }
 0x188   : >> { %v529_v42 = vrot.slane %v1452_v40, 4  ;;  %v524_v43 = vadd.f32 %v1450_v39, %v523_v41 }
 0x18a   : >> { %v530_v44 = vadd.f32 %v1452_v40, %v529_v42  ;;  %v525_v45 = vrot.slane %v524_v43, 2 }
 0x18c   : >> { %v531_v46 = vrot.slane %v530_v44, 2  ;;  %v526_v47 = vadd.f32 %v525_v45, %v524_v43 }
 0x18e   : >> { %v532_v48 = vadd.f32 %v531_v46, %v530_v44  ;;  %v527_v49 = vrot.slane %v526_v47, 1 }
 0x190   : >> { %v533_v50 = vrot.slane %v532_v48, 1  ;;  %v528_v51 = vadd.f32 %v527_v49, %v526_v47 }
 0x192   : >> { %v534_v52 = vadd.f32 %v533_v50, %v532_v48  ;;  %1453 = vrcp.f32 %v528_v51 }
 0x194   : >> { %1455 = vrcp.f32 %v534_v52 }
 0x198   : >> { %v1454_v54 = vpop.eup %1453 }
 0x199   : >> { %v537_v57 = vmul.f32 %v1454_v54, %v1450_v39 }
 0x19a   : >> { %v1456_v56 = vpop.eup %1455 }
 0x19b   : >> { %v538_v60 = vmul.f32 %v1456_v56, %v1452_v40 }
 0x19d   : >> { %v539_v61 = vadd.f32 %v538_v60, %v537_v57 }
 0x19f   : >> { %540 = vadd.xlane.f32.xlu2 %v539_v61 }
 0x212   : >> { %v541_v62 = vpop.xlane.xlu2 %540 }
 0x213   : >> { %v542_v63 = vadd.f32 1e-06, %v541_v62 }
 0x215   : >> { %1457 = vrcp.f32 %v542_v63  ;;  %v554_v25 = vand.u32 2147483648, %v542_v63  ;;  %v552_v27 = vand.u32 2147483647, %v542_v63  ;;  %vm548_vm2 = vweird.f32 %v542_v63 }
 0x217   : >> { %v555_v29 = vor.u32 1.1754944e-38, %v554_v25  ;;  %vm553_vm4 = vcmp.eq.f32.partialorder %v552_v27, 8.507059e+37 }
 0x21b   : >> { %v1458_v22 = vpop.eup %1457 }
 0x21c   : >> { %v544_v23 = vmul.f32 %v1458_v22, %v542_v63  ;;  %vm549_vm1 = vweird.f32 %v1458_v22 }
 0x21d   : >> { %vm550_vm3 = vmor %vm548_vm2, %vm549_vm1 }
 0x21e   : >> { %v545_v24 = vsub.f32 1.0, %v544_v23 }
 0x220   : >> { %v546_v26 = vmul.f32 %v1458_v22, %v545_v24 }
 0x222   : >> { %v547_v28 = vadd.f32 %v1458_v22, %v546_v26 }
 0x224   : >> { %v551_v30 = vsel %vm550_vm3, %v1458_v22, %v547_v28 }
 0x225   : >> { %v556_v31 = vsel %vm553_vm4, %v555_v29, %v551_v30 }
 0x226   : >> { %v557_v32 = vmul.f32 %v556_v31, %v537_v57  ;;  %v558_v33 = vmul.f32 %v556_v31, %v538_v60 }
 0x228   : >> { %v559_v34 = vpack.c.bf16 %v557_v32, %v557_v32  ;;  %v560_v35 = vpack.c.bf16 %v558_v33, %v558_v33 }
 0x22a   : >> { %569 = vmatmul.bf16.vlgmr.msrb.gmra.mxu2 %v559_v34  ;;  %582 = vmatmul.bf16.vlgmr.msrb.gmra.mxu3 %v560_v35 }
 0x22b   : >> { %855 = vmatpush.bf16.xpose.msrb.mxu2 %v1919_v53  ;;  %868 = vmatpush.bf16.xpose.msrb.mxu3 %v1921_v55 }
 0x233   : >> { %856 = vmatpush.bf16.xpose.msrb.mxu2 %v1927_v58  ;;  %869 = vmatpush.bf16.xpose.msrb.mxu3 %v1929_v59 }
 0x2ad   : >> { %v570_v36 = vpop.f32.mrf.mxu2  ;;  %v583_v37 = vpop.f32.mrf.mxu3 }
 0x2ae   : >> { %v584_v38 = vadd.f32 %v583_v37, %v570_v36 }
 0x2b0   : >> { %v587_v39 = vmul.f32 %v584_v38, %v584_v38 }
 0x2b2   : >> { %v588_v40 = vsel %vm426_vm0, %v587_v39, 0.0 }
 0x2b3   : >> { %589 = vadd.xlane.f32.xlu2 %v588_v40 }
 0x2b5   : >> { %v572_v41 = vpop.f32.mrf.mxu2  ;;  %v585_v42 = vpop.f32.mrf.mxu3 }
 0x326   : >> { %v590_v43 = vpop.xlane.xlu2 %589 }
 0x327   : >> { %1459 = vrsqrt.f32 %v590_v43  ;;  %vm598_vm5 = vcmp.eq.f32.partialorder %v590_v43, inf  ;;  %v601_v59 = vand.u32 2147483648, %v590_v43  ;;  %vm600_vm6 = vcmp.eq.f32.partialorder %v590_v43, 0.0 }
 0x32d   : >> { %v1460_v44 = vpop.eup %1459 }
 0x32e   : >> { %v592_v45 = vmul.f32 %v1460_v44, %v590_v43 }
 0x330   : >> { %v593_v53 = vmul.f32 %v1460_v44, %v592_v45 }
 0x332   : >> { %v594_v46 = vmul.f32 0.5, %v593_v53 }
 0x334   : >> { %v595_v55 = vsub.f32 1.5, %v594_v46 }
 0x336   : >> { %v596_v47 = vmul.f32 %v1460_v44, %v595_v55 }
 0x338   : >> { %v597_v58 = vmul.f32 %v596_v47, %v590_v43 }
 0x33a   : >> { %v599_v48 = vsel %vm598_vm5, %v590_v43, %v597_v58 }
 0x33b   : >> { %v602_v49 = vsel %vm600_vm6, %v601_v59, %v599_v48  ;;  %vm935_vm6 = vcmask 1043456  }
 0x33c   : >> { %v603_v50 = vadd.f32 1e-06, %v602_v49 }
 0x33e   : >> { %1461 = vrcp.f32 %v603_v50  ;;  %v615_v56 = vand.u32 2147483648, %v603_v50  ;;  %v613_v60 = vand.u32 2147483647, %v603_v50  ;;  %vm609_vm8 = vweird.f32 %v603_v50 }
 0x340   : >> { %v616_v62 = vor.u32 1.1754944e-38, %v615_v56  ;;  %vm614_vm10 = vcmp.eq.f32.partialorder %v613_v60, 8.507059e+37 }
 0x344   : >> { %v1462_v51 = vpop.eup %1461 }
 0x345   : >> { %v605_v52 = vmul.f32 %v1462_v51, %v603_v50  ;;  %vm610_vm7 = vweird.f32 %v1462_v51 }
 0x346   : >> { %vm611_vm9 = vmor %vm609_vm8, %vm610_vm7 }
 0x347   : >> { %v606_v54 = vsub.f32 1.0, %v605_v52 }
 0x349   : >> { %v607_v57 = vmul.f32 %v1462_v51, %v606_v54 }
 0x34b   : >> { %v608_v61 = vadd.f32 %v1462_v51, %v607_v57 }
 0x34d   : >> { %v612_v63 = vsel %vm611_vm9, %v1462_v51, %v608_v61 }
 0x34e   : >> { %v617_v22 = vsel %vm614_vm10, %v616_v62, %v612_v63 }
 0x34f   : >> { %v618_v23 = vmul.f32 %v617_v22, %v584_v38 }
 0x351   : >> { %v619_v24 = vpack.c.bf16 %v618_v23, %v618_v23 }
 0x353   : >> { %1335 = vmatmul.msk.bf16.vlgmr.msrb.gmra.mxu0 %vm426_vm0, %v619_v24  ;;  %1336 = vmatmul.msk.bf16.vlgmr.msrb.gmra.mxu1 %vm426_vm0, %v619_v24 }
 0x3d0   : >> { %v632_v25 = vpop.f32.mrf.mxu0  ;;  %v645_v26 = vpop.f32.mrf.mxu1 }
 0x3d1   : >> { %v649_v27 = vrot.slane %v632_v25, 4  ;;  %v655_v28 = vrot.slane %v645_v26, 4 }
 0x3d3   : >> { %v650_v29 = vmax.f32 %v632_v25, %v649_v27  ;;  %v656_v30 = vmax.f32 %v645_v26, %v655_v28 }
 0x3d5   : >> { %v651_v31 = vrot.slane %v650_v29, 2  ;;  %v657_v32 = vrot.slane %v656_v30, 2 }
 0x3d7   : >> { %v652_v33 = vmax.f32 %v650_v29, %v651_v31  ;;  %v658_v34 = vmax.f32 %v656_v30, %v657_v32 }
 0x3d8   : >> { %v634_v35 = vpop.f32.mrf.mxu0  ;;  %v647_v36 = vpop.f32.mrf.mxu1 }
 0x3d9   : >> { %v653_v37 = vrot.slane %v652_v33, 1  ;;  %v659_v39 = vrot.slane %v658_v34, 1 }
 0x3db   : >> { %v654_v38 = vmax.f32 %v652_v33, %v653_v37  ;;  %v660_v40 = vmax.f32 %v658_v34, %v659_v39 }
 0x3dd   : >> { %v661_v41 = vsub.f32 %v632_v25, %v654_v38  ;;  %v662_v42 = vsub.f32 %v645_v26, %v660_v40 }
 0x3df   : >> { %v663_v43 = vmul.f32 1.442695, %v661_v41  ;;  %v665_v44 = vmul.f32 1.442695, %v662_v42 }
 0x3e1   : >> { %1463 = vpow2.f32 %v663_v43 }
 0x3e2   : >> { %1465 = vpow2.f32 %v665_v44 }
 0x3e7   : >> { %v1464_v45 = vpop.eup %1463 }
 0x3e8   : >> { %v1466_v53 = vpop.eup %1465  ;;  %v667_v46 = vrot.slane %v1464_v45, 4 }
 0x3e9   : >> { %v673_v55 = vrot.slane %v1466_v53, 4 }
 0x3ea   : >> { %v668_v47 = vadd.f32 %v1464_v45, %v667_v46 }
 0x3eb   : >> { %v674_v58 = vadd.f32 %v1466_v53, %v673_v55 }
 0x3ec   : >> { %v669_v59 = vrot.slane %v668_v47, 2 }
 0x3ed   : >> { %v675_v48 = vrot.slane %v674_v58, 2 }
 0x3ee   : >> { %v670_v49 = vadd.f32 %v669_v59, %v668_v47 }
 0x3ef   : >> { %v676_v50 = vadd.f32 %v675_v48, %v674_v58 }
 0x3f0   : >> { %v671_v51 = vrot.slane %v670_v49, 1 }
 0x3f1   : >> { %v677_v52 = vrot.slane %v676_v50, 1 }
 0x3f2   : >> { %v672_v54 = vadd.f32 %v671_v51, %v670_v49 }
 0x3f3   : >> { %v678_v56 = vadd.f32 %v677_v52, %v676_v50 }
 0x3f4   : >> { %1467 = vrcp.f32 %v672_v54 }
 0x3f5   : >> { %1469 = vrcp.f32 %v678_v56 }
 0x3fa   : >> { %v1468_v57 = vpop.eup %1467 }
 0x3fb   : >> { %v1470_v60 = vpop.eup %1469  ;;  %v681_v61 = vmul.f32 %v1468_v57, %v1464_v45 }
 0x3fc   : >> { %v682_v62 = vmul.f32 %v1470_v60, %v1466_v53 }
 0x3fe   : >> { %v683_v63 = vadd.f32 %v682_v62, %v681_v61 }
 0x400   : >> { %684 = vadd.xlane.f32.xlu0 %v683_v63 }
 0x414   : >> { %1048 = vperm.xlu0 %1446, %v1847_v13  }
 0x41c   : >> { %1063 = vperm.xlu0 %1446, %v1862_v16  }
 0x424   : >> { %1081 = vperm.xlu0 %1446, %v1872_v18  }
 0x42c   : >> { %1091 = vperm.xlu0 %1446, %v1882_v20  }
 0x473   : >> { %v685_v22 = vpop.xlane.xlu0 %684 }
 0x474   : >> { %v686_v23 = vadd.f32 1e-06, %v685_v22 }
 0x476   : >> { %1471 = vrcp.f32 %v686_v23  ;;  %v698_v27 = vand.u32 2147483648, %v686_v23  ;;  %v696_v29 = vand.u32 2147483647, %v686_v23  ;;  %vm692_vm12 = vweird.f32 %v686_v23 }
 0x478   : >> { %v699_v31 = vor.u32 1.1754944e-38, %v698_v27  ;;  %vm697_vm14 = vcmp.eq.f32.partialorder %v696_v29, 8.507059e+37 }
 0x47c   : >> { %v1472_v24 = vpop.eup %1471 }
 0x47d   : >> { %v688_v25 = vmul.f32 %v1472_v24, %v686_v23  ;;  %vm693_vm11 = vweird.f32 %v1472_v24 }
 0x47e   : >> { %vm694_vm13 = vmor %vm692_vm12, %vm693_vm11 }
 0x47f   : >> { %v689_v26 = vsub.f32 1.0, %v688_v25 }
 0x481   : >> { %v690_v28 = vmul.f32 %v1472_v24, %v689_v26 }
 0x483   : >> { %v691_v30 = vadd.f32 %v1472_v24, %v690_v28 }
 0x485   : >> { %v695_v32 = vsel %vm694_vm13, %v1472_v24, %v691_v30 }
 0x486   : >> { %v700_v33 = vsel %vm697_vm14, %v699_v31, %v695_v32 }
 0x487   : >> { %v701_v34 = vmul.f32 %v700_v33, %v681_v61  ;;  %v702_v35 = vmul.f32 %v700_v33, %v682_v62 }
 0x489   : >> { %v703_v36 = vpack.c.bf16 %v701_v34, %v701_v34  ;;  %v704_v37 = vpack.c.bf16 %v702_v35, %v702_v35 }
 0x48b   : >> { %713 = vmatmul.bf16.vlgmr.msra.gmra.mxu2 %v703_v36  ;;  %726 = vmatmul.bf16.vlgmr.msra.gmra.mxu3 %v704_v37 }
 0x50e   : >> { %v714_v39 = vpop.f32.mrf.mxu2  ;;  %v727_v38 = vpop.f32.mrf.mxu3 }
 0x50f   : >> { %v728_v40 = vadd.f32 %v727_v38, %v714_v39 }
 0x511   : >> { %v731_v41 = vmul.f32 %v728_v40, %v728_v40 }
 0x513   : >> { %v732_v42 = vsel %vm426_vm0, %v731_v41, 0.0 }
 0x514   : >> { %733 = vadd.xlane.f32.xlu1 %v732_v42 }
 0x516   : >> { %v716_v43 = vpop.f32.mrf.mxu2  ;;  %v729_v44 = vpop.f32.mrf.mxu3 }
 0x52d   : >> { %1053 = vperm.xlu1 %1447, %v1852_v14  }
 0x535   : >> { %1076 = vperm.xlu1 %1447, %v1867_v17  }
 0x53d   : >> { %1086 = vperm.xlu1 %1447, %v1877_v19  }
 0x587   : >> { %v734_v45 = vpop.xlane.xlu1 %733 }
 0x588   : >> { %1473 = vrsqrt.f32 %v734_v45  ;;  %vm742_vm15 = vcmp.eq.f32.partialorder %v734_v45, inf  ;;  %v745_v49 = vand.u32 2147483648, %v734_v45  ;;  %vm744_vm1 = vcmp.eq.f32.partialorder %v734_v45, 0.0 }
 0x58e   : >> { %v1474_v53 = vpop.eup %1473 }
 0x58f   : >> { %v736_v46 = vmul.f32 %v1474_v53, %v734_v45 }
 0x591   : >> { %v737_v55 = vmul.f32 %v1474_v53, %v736_v46 }
 0x593   : >> { %v738_v47 = vmul.f32 0.5, %v737_v55 }
 0x595   : >> { %v739_v58 = vsub.f32 1.5, %v738_v47 }
 0x597   : >> { %v740_v59 = vmul.f32 %v1474_v53, %v739_v58 }
 0x599   : >> { %v741_v48 = vmul.f32 %v740_v59, %v734_v45 }
 0x59b   : >> { %v743_v50 = vsel %vm742_vm15, %v734_v45, %v741_v48 }
 0x59c   : >> { %v746_v51 = vsel %vm744_vm1, %v745_v49, %v743_v50 }
 0x59d   : >> { %v747_v52 = vadd.f32 1e-06, %v746_v51 }
 0x59f   : >> { %1475 = vrcp.f32 %v747_v52  ;;  %v759_v60 = vand.u32 2147483648, %v747_v52  ;;  %v757_v62 = vand.u32 2147483647, %v747_v52  ;;  %vm753_vm3 = vweird.f32 %v747_v52 }
 0x5a1   : >> { %v760_v22 = vor.u32 1.1754944e-38, %v759_v60  ;;  %vm758_vm5 = vcmp.eq.f32.partialorder %v757_v62, 8.507059e+37 }
 0x5a5   : >> { %v1476_v54 = vpop.eup %1475 }
 0x5a6   : >> { %v749_v56 = vmul.f32 %v1476_v54, %v747_v52  ;;  %vm754_vm2 = vweird.f32 %v1476_v54 }
 0x5a7   : >> { %vm755_vm4 = vmor %vm753_vm3, %vm754_vm2  ;;  %vm928_vm2 = vcmask 64512  }
 0x5a8   : >> { %v750_v57 = vsub.f32 1.0, %v749_v56 }
 0x5aa   : >> { %v751_v61 = vmul.f32 %v1476_v54, %v750_v57 }
 0x5ac   : >> { %v752_v63 = vadd.f32 %v1476_v54, %v751_v61 }
 0x5ae   : >> { %v756_v23 = vsel %vm755_vm4, %v1476_v54, %v752_v63 }
 0x5af   : >> { %v761_v24 = vsel %vm758_vm5, %v760_v22, %v756_v23 }
 0x5b0   : >> { %v762_v25 = vmul.f32 %v761_v24, %v728_v40 }
 0x5b2   : >> { %v763_v26 = vpack.c.bf16 %v762_v25, %v762_v25 }
 0x5b4   : >> { %1337 = vmatmul.msk.bf16.vlgmr.msra.gmra.mxu0 %vm426_vm0, %v763_v26  ;;  %1338 = vmatmul.msk.bf16.vlgmr.msra.gmra.mxu1 %vm426_vm0, %v763_v26 }
 0x631   : >> { %v776_v27 = vpop.f32.mrf.mxu0  ;;  %v789_v28 = vpop.f32.mrf.mxu1 }
 0x632   : >> { %v793_v29 = vrot.slane %v776_v27, 4  ;;  %v799_v30 = vrot.slane %v789_v28, 4 }
 0x634   : >> { %v794_v31 = vmax.f32 %v776_v27, %v793_v29  ;;  %v800_v32 = vmax.f32 %v789_v28, %v799_v30 }
 0x636   : >> { %v795_v33 = vrot.slane %v794_v31, 2  ;;  %v801_v34 = vrot.slane %v800_v32, 2 }
 0x638   : >> { %v796_v35 = vmax.f32 %v794_v31, %v795_v33  ;;  %v802_v36 = vmax.f32 %v800_v32, %v801_v34 }
 0x639   : >> { %v778_v37 = vpop.f32.mrf.mxu0  ;;  %v791_v39 = vpop.f32.mrf.mxu1 }
 0x63a   : >> { %v797_v38 = vrot.slane %v796_v35, 1  ;;  %v803_v41 = vrot.slane %v802_v36, 1 }
 0x63c   : >> { %v798_v40 = vmax.f32 %v796_v35, %v797_v38  ;;  %v804_v42 = vmax.f32 %v802_v36, %v803_v41 }
 0x63e   : >> { %v805_v43 = vsub.f32 %v776_v27, %v798_v40  ;;  %v806_v44 = vsub.f32 %v789_v28, %v804_v42 }
 0x640   : >> { %v807_v45 = vmul.f32 1.442695, %v805_v43  ;;  %v809_v53 = vmul.f32 1.442695, %v806_v44 }
 0x642   : >> { %1477 = vpow2.f32 %v807_v45 }
 0x643   : >> { %1479 = vpow2.f32 %v809_v53 }
 0x648   : >> { %v1478_v46 = vpop.eup %1477 }
 0x649   : >> { %v1480_v55 = vpop.eup %1479  ;;  %v811_v47 = vrot.slane %v1478_v46, 4 }
 0x64a   : >> { %v817_v58 = vrot.slane %v1480_v55, 4 }
 0x64b   : >> { %v812_v59 = vadd.f32 %v1478_v46, %v811_v47 }
 0x64c   : >> { %v818_v48 = vadd.f32 %v1480_v55, %v817_v58 }
 0x64d   : >> { %v813_v49 = vrot.slane %v812_v59, 2 }
 0x64e   : >> { %v819_v50 = vrot.slane %v818_v48, 2 }
 0x64f   : >> { %v814_v51 = vadd.f32 %v813_v49, %v812_v59 }
 0x650   : >> { %v820_v52 = vadd.f32 %v819_v50, %v818_v48 }
 0x651   : >> { %v815_v54 = vrot.slane %v814_v51, 1 }
 0x652   : >> { %v821_v56 = vrot.slane %v820_v52, 1 }
 0x653   : >> { %v816_v57 = vadd.f32 %v815_v54, %v814_v51 }
 0x654   : >> { %v822_v60 = vadd.f32 %v821_v56, %v820_v52 }
 0x655   : >> { %1481 = vrcp.f32 %v816_v57 }
 0x656   : >> { %1483 = vrcp.f32 %v822_v60 }
 0x65b   : >> { %v1482_v61 = vpop.eup %1481 }
 0x65c   : >> { %v1484_v62 = vpop.eup %1483  ;;  %v825_v63 = vmul.f32 %v1482_v61, %v1478_v46 }
 0x65d   : >> { %v826_v22 = vmul.f32 %v1484_v62, %v1480_v55 }
 0x65e   : >> { %v910_v23 = vpack.c.bf16 %v825_v63, %v825_v63 }
 0x65f   : >> { %v827_v24 = vadd.f32 %v826_v22, %v825_v63  ;;  %v911_v25 = vpack.c.bf16 %v826_v22, %v826_v22 }
 0x660   : >> { %v937_v26 = vsel %vm935_vm6, %v910_v23, 0 }
 0x661   : >> { %828 = vadd.xlane.f32.xlu2 %v827_v24  ;;  %949 = vmatpush.bf16.msrb.mxu0 %v937_v26  ;;  %v940_v27 = vsel %vm935_vm6, %v911_v25, 0 }
 0x662   : >> { %968 = vmatpush.bf16.msrb.mxu1 %v940_v27 }
 0x6d4   : >> { %v829_v28 = vpop.xlane.xlu2 %828 }
 0x6d5   : >> { %v830_v29 = vadd.f32 1e-06, %v829_v28 }
 0x6d7   : >> { %1485 = vrcp.f32 %v830_v29  ;;  %v842_v33 = vand.u32 2147483648, %v830_v29  ;;  %v840_v35 = vand.u32 2147483647, %v830_v29  ;;  %vm836_vm8 = vweird.f32 %v830_v29 }
 0x6d9   : >> { %v843_v37 = vor.u32 1.1754944e-38, %v842_v33  ;;  %vm841_vm10 = vcmp.eq.f32.partialorder %v840_v35, 8.507059e+37 }
 0x6dd   : >> { %v1486_v30 = vpop.eup %1485 }
 0x6de   : >> { %v832_v31 = vmul.f32 %v1486_v30, %v830_v29  ;;  %vm837_vm7 = vweird.f32 %v1486_v30 }
 0x6df   : >> { %vm838_vm9 = vmor %vm836_vm8, %vm837_vm7 }
 0x6e0   : >> { %v833_v32 = vsub.f32 1.0, %v832_v31 }
 0x6e2   : >> { %v834_v34 = vmul.f32 %v1486_v30, %v833_v32 }
 0x6e4   : >> { %v835_v36 = vadd.f32 %v1486_v30, %v834_v34 }
 0x6e6   : >> { %v839_v39 = vsel %vm838_vm9, %v1486_v30, %v835_v36 }
 0x6e7   : >> { %v844_v38 = vsel %vm841_vm10, %v843_v37, %v839_v39 }
 0x6e8   : >> { %v845_v41 = vmul.f32 %v844_v38, %v825_v63  ;;  %v846_v40 = vmul.f32 %v844_v38, %v826_v22 }
 0x6ea   : >> { %v847_v42 = vpack.c.bf16 %v845_v41, %v845_v41  ;;  %v848_v43 = vpack.c.bf16 %v846_v40, %v846_v40 }
 0x6ec   : >> { %857 = vmatmul.bf16.vlgmr.msrb.gmra.mxu2 %v847_v42  ;;  %870 = vmatmul.bf16.vlgmr.msrb.gmra.mxu3 %v848_v43 }
 0x76f   : >> { %v858_v44 = vpop.f32.mrf.mxu2  ;;  %v871_v45 = vpop.f32.mrf.mxu3 }
 0x770   : >> { %v872_v53 = vadd.f32 %v871_v45, %v858_v44 }
 0x772   : >> { %v875_v46 = vmul.f32 %v872_v53, %v872_v53 }
 0x774   : >> { %v876_v55 = vsel %vm426_vm0, %v875_v46, 0.0 }
 0x775   : >> { %877 = vadd.xlane.f32.xlu2 %v876_v55 }
 0x777   : >> { %v860_v47 = vpop.f32.mrf.mxu2  ;;  %v873_v58 = vpop.f32.mrf.mxu3 }
 0x7e8   : >> { %v878_v59 = vpop.xlane.xlu2 %877 }
 0x7e9   : >> { %1487 = vrsqrt.f32 %v878_v59  ;;  %vm886_vm11 = vcmp.eq.f32.partialorder %v878_v59, inf  ;;  %v889_v57 = vand.u32 2147483648, %v878_v59  ;;  %vm888_vm12 = vcmp.eq.f32.partialorder %v878_v59, 0.0 }
 0x7ef   : >> { %v1488_v48 = vpop.eup %1487 }
 0x7f0   : >> { %v880_v49 = vmul.f32 %v1488_v48, %v878_v59 }
 0x7f2   : >> { %v881_v50 = vmul.f32 %v1488_v48, %v880_v49 }
 0x7f4   : >> { %v882_v51 = vmul.f32 0.5, %v881_v50  ;;  %v1346_v50 = vor.u32 %v1812_v6, %v1807_v5 }
 0x7f6   : >> { %v883_v52 = vsub.f32 1.5, %v882_v51  ;;  %v1350_v51 = vor.u32 %v1822_v8, %v1817_v7 }
 0x7f8   : >> { %v884_v54 = vmul.f32 %v1488_v48, %v883_v52  ;;  %v1049_v52 = vpop.permute.xlu0 %1048 }
 0x7fa   : >> { %v885_v56 = vmul.f32 %v884_v54, %v878_v59  ;;  %v1054_v54 = vpop.permute.xlu1 %1053 }
 0x7fc   : >> { %v887_v60 = vsel %vm886_vm11, %v878_v59, %v885_v56  ;;  %v372_v56 = vld [vmem:[%s1899_s25] sm:$0xff] }
 0x7fd   : >> { %v890_v61 = vsel %vm888_vm12, %v889_v57, %v887_v60 }
 0x7fe   : >> { %v891_v62 = vadd.f32 1e-06, %v890_v61 }
 0x800   : >> { %1489 = vrcp.f32 %v891_v62  ;;  %v903_v24 = vand.u32 2147483648, %v891_v62  ;;  %v901_v26 = vand.u32 2147483647, %v891_v62  ;;  %vm897_vm14 = vweird.f32 %v891_v62  ;;  %v1064_v57 = vpop.permute.xlu0 %1063 }
 0x802   : >> { %v904_v28 = vor.u32 1.1754944e-38, %v903_v24  ;;  %vm902_vm1 = vcmp.eq.f32.partialorder %v901_v26, 8.507059e+37  ;;  %v1077_v24 = vpop.permute.xlu1 %1076 }
 0x806   : >> { %v1490_v63 = vpop.eup %1489 }
 0x807   : >> { %v893_v22 = vmul.f32 %v1490_v63, %v891_v62  ;;  %vm898_vm13 = vweird.f32 %v1490_v63 }
 0x808   : >> { %vm899_vm15 = vmor %vm897_vm14, %vm898_vm13 }
 0x809   : >> { %v894_v23 = vsub.f32 1.0, %v893_v22 }
 0x80b   : >> { %v895_v25 = vmul.f32 %v1490_v63, %v894_v23  ;;  %v1103_v23 = vunpack.c.h.bf16 %v372_v56 }
 0x80d   : >> { %v896_v27 = vadd.f32 %v1490_v63, %v895_v25 }
 0x80f   : >> { %v900_v29 = vsel %vm899_vm15, %v1490_v63, %v896_v27  ;;  %v1102_v63 = vunpack.c.l.bf16 %v372_v56 }
 0x810   : >> { %v905_v30 = vsel %vm902_vm1, %v904_v28, %v900_v29  ;;  %v373_v29 = vld [vmem:[%s1899_s25 + $0x8] sm:$0xff] }
 0x811   : >> { %v906_v31 = vmul.f32 %v905_v30, %v872_v53 }
 0x813   : >> { %v909_v32 = vpack.c.bf16 %v906_v31, %v906_v31  ;;  %908 = vst.msk [vmem:[%s907_s21] sm:$0xff] %vm426_vm0, %v906_v31 }
 0x815   : >> { %912 = vxpose.xlu2.c.b16.start.end [1/1] (short) (narrow) %v909_v32, 32 }
 0x877   : >> { %1448 = vset.pattern.permute.xlu2 %v1631_v21 }
 0x88e   : >> { %1058 = vperm.xlu2 %1448, %v1857_v15  }
 0x8b6   : >> { %v920_v33 = vpop.trf.xlu2 }
 0x8b7   : >> { %1339 = vmatmul.msk.bf16.vlgmr.msrb.gmra.mxu0 %vm928_vm2, %v920_v33  ;;  %1341 = vmatmul.msk.bf16.vlgmr.msrb.gmra.mxu1 %vm928_vm2, %v920_v33 }
 0x8c6   : >> { %v921_v34 = vpop.trf.xlu2 }
 0x8c7   : >> { %1340 = vmatmul.msk.bf16.gmra.mxu0 %vm928_vm2, %v921_v34  ;;  %1342 = vmatmul.msk.bf16.gmra.mxu1 %vm928_vm2, %v921_v34 }
 0x934   : >> { %v951_v35 = vpop.f32.mrf.mxu0  ;;  %v970_v36 = vpop.f32.mrf.mxu1 }
 0x935   : >> { %v980_v58 = vmax.f32 %v951_v35, 0.0  ;;  %v981_v59 = vmax.f32 %v970_v36, 0.0  ;;  %v1104_v35 = vunpack.c.l.bf16 %v373_v29 }
 0x93c   : >> { %v953_v37 = vpop.f32.mrf.mxu0  ;;  %v972_v39 = vpop.f32.mrf.mxu1 }
 0x93d   : >> { %v982_v53 = vmax.f32 %v953_v37, 0.0  ;;  %v983_v46 = vmax.f32 %v972_v39, 0.0  ;;  %v1105_v37 = vunpack.c.h.bf16 %v373_v29  ;;  %v1082_v39 = vpop.permute.xlu0 %1081 }
 0x93f   : >> { %v988_v48 = vpack.c.bf16 %v982_v53, %v980_v58  ;;  %v989_v49 = vpack.c.bf16 %v983_v46, %v981_v59 }
 0x944   : >> { %v956_v38 = vpop.f32.mrf.mxu0  ;;  %v975_v41 = vpop.f32.mrf.mxu1 }
 0x945   : >> { %v984_v43 = vmax.f32 %v956_v38, 0.0  ;;  %v985_v44 = vmax.f32 %v975_v41, 0.0 }
 0x94c   : >> { %v958_v40 = vpop.f32.mrf.mxu0  ;;  %v977_v42 = vpop.f32.mrf.mxu1 }
 0x94d   : >> { %v986_v21 = vmax.f32 %v958_v40, 0.0  ;;  %v987_v45 = vmax.f32 %v977_v42, 0.0 }
 0x94f   : >> { %v990_v55 = vpack.c.bf16 %v986_v21, %v984_v43  ;;  %v991_v47 = vpack.c.bf16 %v987_v45, %v985_v44  ;;  %v374_v43 = vld [vmem:[%s1899_s25 + $0x10] sm:$0xff]  ;;  %v1059_v44 = vpop.permute.xlu2 %1058 }
 0x950   : >> { %v1106_v59 = vunpack.c.l.bf16 %v374_v43 }
 0x951   : >> { %1014 = vmatpush.bf16.msra.mxu2 %v990_v55  ;;  %1033 = vmatpush.bf16.msra.mxu3 %v991_v47  ;;  %v1107_v55 = vunpack.c.h.bf16 %v374_v43 }
 0x955   : >> { %1015 = vmatpush.bf16.msra.mxu2 %v988_v48  ;;  %1034 = vmatpush.bf16.msra.mxu3 %v989_v49  ;;  %v1087_v48 = vpop.permute.xlu1 %1086 }
 0x958   : >> { %1351 = vmatmul.msk.bf16.vlgmr.msra.gmra.mxu2 %vm426_vm0, %v1346_v50  ;;  %1353 = vmatmul.msk.bf16.vlgmr.msra.gmra.mxu3 %vm426_vm0, %v1346_v50 }
 0x968   : >> { %1352 = vmatmul.msk.bf16.gmra.mxu2 %vm426_vm0, %v1350_v51  ;;  %1354 = vmatmul.msk.bf16.gmra.mxu3 %vm426_vm0, %v1350_v51 }
 0x9db   : >> { %v1017_v60 = vpop.f32.mrf.mxu2  ;;  %v1036_v61 = vpop.f32.mrf.mxu3 }
 0x9dc   : >> { %v1066_v62 = vmul.f32 %v1049_v52, %v1017_v60  ;;  %v1067_v22 = vmul.f32 %v1049_v52, %v1036_v61 }
 0x9de   : >> { %v1094_v25 = vadd.f32 %v1077_v24, %v1066_v62  ;;  %v1095_v26 = vadd.f32 %v1077_v24, %v1067_v22 }
 0x9e0   : >> { %v1110_v27 = vadd.f32 %v1102_v63, %v1094_v25  ;;  %v1111_v28 = vadd.f32 %v1103_v23, %v1095_v26  ;;  %v1092_v25 = vpop.permute.xlu0 %1091 }
 0x9e2   : >> { %v1118_v30 = vmax.f32 %v1110_v27, 0.0  ;;  %v1119_v31 = vmax.f32 %v1111_v28, 0.0 }
 0x9e3   : >> { %v1019_v32 = vpop.f32.mrf.mxu2  ;;  %v1038_v33 = vpop.f32.mrf.mxu3 }
 0x9e4   : >> { %1128 = vst [vmem:[%s1985_s22] sm:$0xff] %v1118_v30  ;;  %v1068_v34 = vmul.f32 %v1054_v54, %v1019_v32  ;;  %v1069_v36 = vmul.f32 %v1054_v54, %v1038_v33  ;;  %v375_v54 = vld [vmem:[%s1899_s25 + $0x18] sm:$0xff]  ;;  %s1157_s25 = sshll.u32 (%p365_p6), %s1154_s24, 4  ;;  %s1158_s25 = int_to_ptr.hbm [resolvable:$true] %s1157_s25 }
 0x9e5   : >> { %1129 = vst [vmem:[%s1985_s22 + $0x8] sm:$0xff] %v1119_v31  ;;  %v1108_v22 = vunpack.c.l.bf16 %v375_v54  ;;  %v1109_v24 = vunpack.c.h.bf16 %v375_v54  ;;  %s1535_s21 = sshra.s32 (%p365_p6), %s1158_s25, 4  ;;  %s1536_s21 = int_to_ptr.hbm [resolvable:$true] %s1535_s21 }
 0x9e6   : >> { %v1096_v38 = vadd.f32 %v1082_v39, %v1068_v34  ;;  %v1097_v41 = vadd.f32 %v1082_v39, %v1069_v36  ;;  %s1537_s15 = scalar_lea.hbm (%p365_p6), %s1536_s21, 128  ;;  %p1542_p1 = scmp.lt.s32.totalorder (%p365_p6), %s1536_s21, %s2058_s7 }
 0x9e7   : > { %p1538_p9 = scmp.ne.s32.totalorder (%p365_p6), %s1536_s21, %s1537_s15 }
 0x9e8   : >> { %v1112_v40 = vadd.f32 %v1104_v35, %v1096_v38  ;;  %v1113_v42 = vadd.f32 %v1105_v37, %v1097_v41 }
 0x9e9   : > { %p1539_p13 = pnand (%p365_p6), %p1538_p9, %p1731_p11 }
 0x9ea   : >> { %v1120_v21 = vmax.f32 %v1112_v40, 0.0  ;;  %v1121_v45 = vmax.f32 %v1113_v42, 0.0 }
 0x9eb   : >> { %v1041_v53 = vpop.f32.mrf.mxu3  ;;  %v1022_v46 = vpop.f32.mrf.mxu2  ;;  %p1540_p0 = pneg (%p365_p6), %p1539_p13 }
 0x9ec   : >> { %1130 = vst [vmem:[%s1985_s22 + $0x10] sm:$0xff] %v1120_v21  ;;  %v1071_v47 = vmul.f32 %v1059_v44, %v1041_v53  ;;  %v1070_v58 = vmul.f32 %v1059_v44, %v1022_v46 }
 0x9ed   : >> { %1131 = vst [vmem:[%s1985_s22 + $0x18] sm:$0xff] %v1121_v45 }
 0x9ee   : >> { %v1099_v49 = vadd.f32 %v1087_v48, %v1071_v47  ;;  %v1098_v50 = vadd.f32 %v1087_v48, %v1070_v58 }
 0x9f0   : >> { %v1115_v51 = vadd.f32 %v1107_v55, %v1099_v49  ;;  %v1114_v52 = vadd.f32 %v1106_v59, %v1098_v50 }
 0x9f2   : >> { %v1123_v56 = vmax.f32 %v1115_v51, 0.0  ;;  %v1122_v60 = vmax.f32 %v1114_v52, 0.0 }
 0x9f3   : >> { %v1024_v61 = vpop.f32.mrf.mxu2  ;;  %v1043_v62 = vpop.f32.mrf.mxu3 }
 0x9f4   : >> { %1133 = vst [vmem:[%s1985_s22 + $0x28] sm:$0xff] %v1123_v56  ;;  %v1072_v63 = vmul.f32 %v1064_v57, %v1024_v61  ;;  %v1073_v23 = vmul.f32 %v1064_v57, %v1043_v62 }
 0x9f5   : >> { %1132 = vst [vmem:[%s1985_s22 + $0x20] sm:$0xff] %v1122_v60 }
 0x9f6   : >> { %v1100_v26 = vadd.f32 %v1092_v25, %v1072_v63  ;;  %v1101_v27 = vadd.f32 %v1092_v25, %v1073_v23 }
 0x9f8   : >> { %v1116_v28 = vadd.f32 %v1108_v22, %v1100_v26  ;;  %v1117_v29 = vadd.f32 %v1109_v24, %v1101_v27 }
 0x9f9   : > { %367 = sbr.rel (!%p365_p6) target bundleno = 62 (0x3e), region = 120 }
 0x9fa   : >> { %v1124_v30 = vmax.f32 %v1116_v28, 0.0  ;;  %v1125_v31 = vmax.f32 %v1117_v29, 0.0 }
 0x9fc   : >> { %1134 = vst [vmem:[%s1985_s22 + $0x30] sm:$0xff] %v1124_v30 }
 0x9fd   : >> { %1135 = vst [vmem:[%s1985_s22 + $0x38] sm:$0xff] %v1125_v31  ;;  %s1541_s22 = scalar_lea.hbm (%p365_p6), %s2058_s7, 256 }
 0x9fe   : > { %p1543_p3 = scmp.lt.s32.totalorder %s1541_s22, %s1537_s15 }
 0xa00   : > { %p1544_p4 = por %p1543_p3, %p1542_p1 }
 0xa02   : > { %p1545_p7 = pnand %p1544_p4, %p1540_p0 }
 0xa04   : > { %1548 = shalt.err (!%p1545_p7)
}
 0xa05   : > { %s1632_s29 = smov 256   ;;  %s1633_s23 = smov 16  }
 0xa06   : > { %1382 = dma.vmem_to_hbm [thread:$0]  (%p1731_p11), %s1156_s13, 2048, %s1158_s25, %s1137_s10, %s1632_s29, %s1632_s29, %s1633_s23  }
 0xa07   : > { %s1379_s16 = sshll.u32 %s1702_s9, 4  ;;  %s1172_s19 = sshll.u32 %s1886_s14, 4  ;;  %s1173_s19 = int_to_ptr.vmem [resolvable:$true] %s1172_s19 }
 0xa08   : > { %s1171_s0 = scalar_lea.hbm %s2059_s8, %s1379_s16  ;;  %s1142_s21 = scalar_lea.sflag [#allocation7], %s1767_s26 }
 0xa09   : > { %s1174_s1 = sshll.u32 %s1171_s0, 4  ;;  %s1569_s9 = scalar_lea.hbm %s2059_s8, 32  ;;  %s1175_s1 = int_to_ptr.hbm [resolvable:$true] %s1174_s1 }
 0xa0a   : > { %s1563_s15 = sshra.s32 %s1175_s1, 4  ;;  %s1564_s15 = int_to_ptr.hbm [resolvable:$true] %s1563_s15 }
 0xa0b   : > { %s1565_s12 = scalar_lea.hbm %s1564_s15, 16  ;;  %p1570_p2 = scmp.lt.s32.totalorder %s1564_s15, %s2059_s8 }
 0xa0c   : > { %p1566_p5 = scmp.ne.s32.totalorder %s1564_s15, %s1565_s12  ;;  %p1571_p6 = scmp.lt.s32.totalorder %s1569_s9, %s1565_s12 }
 0xa0e   : > { %p1567_p8 = pnand %p1566_p5, %p1731_p11  ;;  %p1572_p9 = por %p1571_p6, %p1570_p2 }
 0xa10   : > { %p1568_p10 = pneg %p1567_p8 }
 0xa12   : > { %p1573_p13 = pnand %p1572_p9, %p1568_p10 }
 0xa14   : > { %1576 = shalt.err (!%p1573_p13)
}
 0xa15   : > { %s1634_s26 = smov 128   ;;  %s1635_s25 = smov 8  }
 0xa16   : > { %1383 = dma.vmem_to_hbm [thread:$0]  (%p1731_p11), %s1173_s19, 256, %s1175_s1, %s1142_s21, %s1634_s26, %s1634_s26, %s1635_s25  }
 0xa17 PF: > { %s1189_s10 = sand.u32 1, %s1611_s27   ;;  %p2074_p0 = scmp.ge.s32.totalorder %s1623_s30, 2 }
 0xa18   : > { %s1190_s2 = scalar_lea.sflag [#allocation4], %s1189_s10 }
 0xa19   : > { %p1391_p1 = pnand %p2074_p0, %p1735_p12 }
 0xa1b   : > { %p1392_p3 = pneg %p1391_p1 }
 0xa1d   : > { %1602 = dma.done.wait (%p1392_p3), %s1190_s2, 2048  }
 0xa1e   : > { %1604 = vsyncadd (%p1392_p3), %s1190_s2, 4294965248  ;;  %s1200_s29 = scalar_lea.sflag [#allocation7], %s1189_s10 }
 0xa1f   : > { %1606 = dma.done.wait (%p1392_p3), %s1200_s29, 256  }
 0xa20   : > { %1608 = vsyncadd (%p1392_p3), %s1200_s29, 4294967040  ;;  %s2075_s23 = sld [smem:[#allocation11_spill]]  ;;  %p25_p11 = scmp.ge.s32.totalorder %s1706_s11, 4  }
 0xa21   : > { %s2076_s29 = sld [smem:[#allocation12_spill]]  ;;  %s2077_s27 = smov %s1615_s28 }
 0xa22   : > { %s2079_s30 = smov %s1706_s11  ;;  %27 = sbr.rel (!%p25_p11) target bundleno = 11 (0xb), region = 131 }
 0xa26   : > { %s2078_s28 = smov %s2075_s23 }
 0xa27   :  { %1206 = vsyncpa [#allocation3], 1 }
 0xa28   :  { %1208 = vsyncpa [#allocation3 + $0x1], 1 }
 0xa29   :  { %1209 = vsyncpa [#allocation4], 1 }
 0xa2a   :  { %1211 = vsyncpa [#allocation4 + $0x1], 1 }
 0xa2b   :  { %1212 = vsyncpa [#allocation7], 1 }
 0xa2c   :  { %1214 = vsyncpa [#allocation7 + $0x1], 1 }

</bundles_post_ra>
